<compile_context>
chip_gen: v5e
topology: v5e:2x2
jax: 0.10.0
libtpu: 0.0.40
codegen_flags: <defaults>
</compile_context>

<pallas_src>
import functools

import jax
import jax.numpy as jnp
from jax.experimental import pallas as pl
from jax.experimental.pallas import tpu as pltpu

EPS = 1e-5


# ----------------------------------------------------------------------------
# hardware-derived knobs
# ----------------------------------------------------------------------------
_DEFAULT_VMEM_LIMIT = 48 * 1024 * 1024     # safe everywhere (v7x has 64 MiB total)
_vmem_limit_cache = [None]


def _vmem_limit():
    """~75% of physical VMEM, leaving headroom for Mosaic scratch / double buffers."""
    if _vmem_limit_cache[0] is None:
        limit = _DEFAULT_VMEM_LIMIT
        try:
            cap = getattr(pltpu.get_tpu_info(), "vmem_capacity_bytes", None)
            if cap:
                limit = int(cap) * 3 // 4
        except Exception:
            pass
        _vmem_limit_cache[0] = limit
    return _vmem_limit_cache[0]


def _round_up(x, m):
    return ((x + m - 1) // m) * m


def _pick_tm(m):
    # Aim for >=4 row tiles (v7x 2 TCs + pipeline overlap); cap per generation.
    cap = 1024 if _vmem_limit() > (48 << 20) else 512
    tm = _round_up(max(128, -(-m // 4)), 128)
    return int(min(cap, tm))


def _tile_for(padded_dim, pref):
    # padded_dim is a multiple of 128; return the largest tile <= pref dividing it.
    t = min(padded_dim, pref)
    while padded_dim % t:
        t -= 128
    return max(t, 128)


def _pad2d(a, rows, cols):
    r, c = a.shape
    if r == rows and c == cols:
        return a
    return jnp.pad(a, ((0, rows - r), (0, cols - c)))


# ----------------------------------------------------------------------------
# Pallas kernels
# ----------------------------------------------------------------------------
def _mm_shift_act_kernel(x_ref, w_ref, shift_ref, o_ref, acc_ref, *, apply_relu):
    # Grid = (M tiles, N tiles, K tiles); K innermost ("arbitrary").
    k = pl.program_id(2)

    @pl.when(k == 0)
    def _():
        acc_ref[...] = jnp.zeros_like(acc_ref)

    acc_ref[...] += jnp.dot(x_ref[...], w_ref[...],
                            preferred_element_type=jnp.float32)

    @pl.when(k == pl.num_programs(2) - 1)
    def _():
        y = acc_ref[...] + shift_ref[...]
        if apply_relu:
            y = jnp.maximum(y, 0.0)
        o_ref[...] = y.astype(o_ref.dtype)


def _conv3x3_blockdiag_kernel(x_ref, w_ref, shift_ref, o_ref, *, stride, ho, wo):
    # x_ref: (s, s, Hs, Ws, Cin)  phase-split, zero-padded y1, bf16
    # w_ref: (3, 3, Cin, Cout)    block-diagonal dense weight, BN scale folded
    # Output (oh,ow), tap (kh,kw) reads x_ref[kh%s, kw%s, kh//s + oh, kw//s + ow, :].
    s = stride
    cout = o_ref.shape[-1]
    acc = jnp.zeros((ho * wo, cout), jnp.float32)
    for kh in range(3):
        for kw in range(3):
            patch = x_ref[kh % s, kw % s,
                          pl.ds(kh // s, ho), pl.ds(kw // s, wo), :]
            acc = acc + jnp.dot(patch.reshape(ho * wo, patch.shape[-1]),
                                w_ref[kh, kw],
                                preferred_element_type=jnp.float32)
    y = jnp.maximum(acc + shift_ref[...], 0.0)
    o_ref[...] = y.reshape(ho, wo, cout).astype(o_ref.dtype)


def _dual_mm_shift_relu_kernel(x_ref, w_ref, xs_ref, ws_ref, shift_ref, o_ref):
    # conv3 1x1 fused with the projection shortcut 1x1, both BN-folded, + ReLU.
    a = jnp.dot(x_ref[...], w_ref[...], preferred_element_type=jnp.float32)
    b = jnp.dot(xs_ref[...], ws_ref[...], preferred_element_type=jnp.float32)
    o_ref[...] = jnp.maximum(a + b + shift_ref[...], 0.0).astype(o_ref.dtype)


def _mm_shift_res_relu_kernel(x_ref, w_ref, shift_ref, res_ref, o_ref):
    # conv3 1x1 + BN3 + identity residual + ReLU.
    a = jnp.dot(x_ref[...], w_ref[...], preferred_element_type=jnp.float32)
    y = a + shift_ref[...] + res_ref[...].astype(jnp.float32)
    o_ref[...] = jnp.maximum(y, 0.0).astype(o_ref.dtype)


# ----------------------------------------------------------------------------
# pallas_call wrappers (bf16 operands, f32 accumulation)
# ----------------------------------------------------------------------------
def fused_pointwise_conv(x, w, shift, *, relu, out_dtype=jnp.bfloat16):
    """relu?(x @ w + shift). Returns (M, round_up(N,128)); rows un-padded.

    Extra x columns beyond w's K (channel padding) must be zero.
    """
    M, Kx = x.shape
    Kw, N = w.shape
    Kp = _round_up(max(Kx, Kw), 128)
    Np = _round_up(N, 128)
    TM = _pick_tm(M)
    Mp = _round_up(M, TM)
    TN = _tile_for(Np, 256)
    TK = _tile_for(Kp, 512)

    xb = _pad2d(x.astype(jnp.bfloat16), Mp, Kp)
    wb = _pad2d(w.astype(jnp.bfloat16), Kp, Np)
    sh = _pad2d(shift.astype(jnp.float32).reshape(1, N), 1, Np)

    gm, gn, gk = Mp // TM, Np // TN, Kp // TK
    flops = 2 * M * Kw * N
    bytes_acc = int(xb.size * 2 + wb.size * 2
                    + Mp * Np * jnp.dtype(out_dtype).itemsize)
    out = pl.pallas_call(
        functools.partial(_mm_shift_act_kernel, apply_relu=relu),
        out_shape=jax.ShapeDtypeStruct((Mp, Np), out_dtype),
        grid_spec=pltpu.PrefetchScalarGridSpec(
            num_scalar_prefetch=0,
            grid=(gm, gn, gk),
            in_specs=[
                pl.BlockSpec((TM, TK), lambda i, j, k: (i, k)),
                pl.BlockSpec((TK, TN), lambda i, j, k: (k, j)),
                pl.BlockSpec((1, TN), lambda i, j, k: (0, j)),
            ],
            out_specs=pl.BlockSpec((TM, TN), lambda i, j, k: (i, j)),
            scratch_shapes=[pltpu.VMEM((TM, TN), jnp.float32)],
        ),
        compiler_params=pltpu.CompilerParams(
            dimension_semantics=("parallel", "parallel", "arbitrary"),
            vmem_limit_bytes=_vmem_limit(),
        ),
        cost_estimate=pl.CostEstimate(flops=flops, transcendentals=0,
                                      bytes_accessed=bytes_acc),
    )(xb, wb, sh)
    return out[:M] if Mp != M else out


def _pad_phase_split(y, stride):
    """(N,H,W,C) -> (N, s, s, Hs, Ws, C) so that the (kh,kw) tap of a 3x3/pad-1/
    stride-s conv at output (oh,ow) is a contiguous slice (no strided gathers)."""
    N, H, W, C = y.shape
    s = stride
    Ho = (H - 1) // s + 1
    Wo = (W - 1) // s + 1
    Hs = Ho + -(-2 // s)
    Ws = Wo + -(-2 // s)
    yp = jnp.pad(y, ((0, 0), (1, s * Hs - H - 1), (1, s * Ws - W - 1), (0, 0)))
    yp = yp.reshape(N, Hs, s, Ws, s, C)
    yp = jnp.transpose(yp, (0, 2, 4, 1, 3, 5))
    return yp, Ho, Wo


def fused_conv3x3_blockdiag(y_nhwc, w_dense, shift, *, stride,
                            out_dtype=jnp.bfloat16):
    """3x3 pad-1 conv (stride 1|2) + shift + ReLU with a dense (block-diagonal)
    weight.  The im2col is fused in-kernel as 9 shifted dots: no 9x cols in HBM."""
    N, H, W, Cin = y_nhwc.shape
    Cout = w_dense.shape[-1]
    assert Cin % 128 == 0 and Cout % 128 == 0
    s = stride
    ypp, Ho, Wo = _pad_phase_split(y_nhwc.astype(jnp.bfloat16), s)
    Hs, Ws = ypp.shape[3], ypp.shape[4]

    wb = w_dense.astype(jnp.bfloat16)
    sh = shift.astype(jnp.float32).reshape(1, Cout)

    flops = 2 * N * Ho * Wo * 9 * Cin * Cout
    bytes_acc = int(ypp.size * 2 + wb.size * 2 + N * Ho * Wo * Cout * 2)
    out = pl.pallas_call(
        functools.partial(_conv3x3_blockdiag_kernel, stride=s, ho=Ho, wo=Wo),
        out_shape=jax.ShapeDtypeStruct((N, Ho, Wo, Cout), out_dtype),
        grid_spec=pltpu.PrefetchScalarGridSpec(
            num_scalar_prefetch=0,
            grid=(N,),
            in_specs=[
                pl.BlockSpec((None, s, s, Hs, Ws, Cin),
                             lambda n: (n, 0, 0, 0, 0, 0)),
                pl.BlockSpec((3, 3, Cin, Cout), lambda n: (0, 0, 0, 0)),
                pl.BlockSpec((1, Cout), lambda n: (0, 0)),
            ],
            out_specs=pl.BlockSpec((None, Ho, Wo, Cout), lambda n: (n, 0, 0, 0)),
        ),
        compiler_params=pltpu.CompilerParams(
            dimension_semantics=("parallel",),
            vmem_limit_bytes=_vmem_limit(),
        ),
        cost_estimate=pl.CostEstimate(flops=flops, transcendentals=0,
                                      bytes_accessed=bytes_acc),
    )(ypp, wb, sh)
    return out, Ho, Wo


def fused_dual_pointwise_conv(x, w, xs, ws, shift, *, out_dtype=jnp.float32):
    """relu(x @ w + xs @ ws + shift): conv3 + projection shortcut in one kernel."""
    M, Kx = x.shape
    Kw, N = w.shape
    Ksx = xs.shape[1]
    Ksw = ws.shape[0]
    Kp = _round_up(max(Kx, Kw), 128)
    Ksp = _round_up(max(Ksx, Ksw), 128)
    Np = _round_up(N, 128)
    TM = _pick_tm(M)
    Mp = _round_up(M, TM)
    TN = _tile_for(Np, 256)

    xb = _pad2d(x.astype(jnp.bfloat16), Mp, Kp)
    wb = _pad2d(w.astype(jnp.bfloat16), Kp, Np)
    xsb = _pad2d(xs.astype(jnp.bfloat16), Mp, Ksp)
    wsb = _pad2d(ws.astype(jnp.bfloat16), Ksp, Np)
    sh = _pad2d(shift.astype(jnp.float32).reshape(1, N), 1, Np)

    gm, gn = Mp // TM, Np // TN
    flops = 2 * M * N * (Kw + Ksw)
    bytes_acc = int((xb.size + wb.size + xsb.size + wsb.size) * 2 + Mp * Np * 4)
    out = pl.pallas_call(
        _dual_mm_shift_relu_kernel,
        out_shape=jax.ShapeDtypeStruct((Mp, Np), out_dtype),
        grid_spec=pltpu.PrefetchScalarGridSpec(
            num_scalar_prefetch=0,
            grid=(gm, gn),
            in_specs=[
                pl.BlockSpec((TM, Kp), lambda i, j: (i, 0)),
                pl.BlockSpec((Kp, TN), lambda i, j: (0, j)),
                pl.BlockSpec((TM, Ksp), lambda i, j: (i, 0)),
                pl.BlockSpec((Ksp, TN), lambda i, j: (0, j)),
                pl.BlockSpec((1, TN), lambda i, j: (0, j)),
            ],
            out_specs=pl.BlockSpec((TM, TN), lambda i, j: (i, j)),
        ),
        compiler_params=pltpu.CompilerParams(
            dimension_semantics=("parallel", "parallel"),
            vmem_limit_bytes=_vmem_limit(),
        ),
        cost_estimate=pl.CostEstimate(flops=flops, transcendentals=0,
                                      bytes_accessed=bytes_acc),
    )(xb, wb, xsb, wsb, sh)
    return out[:M] if Mp != M else out


def fused_pointwise_conv_residual(x, w, shift, res, *, out_dtype=jnp.float32):
    """relu(x @ w + shift + res): conv3 + identity shortcut in one kernel."""
    M, Kx = x.shape
    Kw, N = w.shape
    Kp = _round_up(max(Kx, Kw), 128)
    Np = _round_up(N, 128)
    TM = _pick_tm(M)
    Mp = _round_up(M, TM)
    TN = _tile_for(Np, 256)

    xb = _pad2d(x.astype(jnp.bfloat16), Mp, Kp)
    wb = _pad2d(w.astype(jnp.bfloat16), Kp, Np)
    rb = _pad2d(res.astype(jnp.float32), Mp, Np)
    sh = _pad2d(shift.astype(jnp.float32).reshape(1, N), 1, Np)

    gm, gn = Mp // TM, Np // TN
    flops = 2 * M * Kw * N
    bytes_acc = int(xb.size * 2 + wb.size * 2 + rb.size * 4 + Mp * Np * 4)
    out = pl.pallas_call(
        _mm_shift_res_relu_kernel,
        out_shape=jax.ShapeDtypeStruct((Mp, Np), out_dtype),
        grid_spec=pltpu.PrefetchScalarGridSpec(
            num_scalar_prefetch=0,
            grid=(gm, gn),
            in_specs=[
                pl.BlockSpec((TM, Kp), lambda i, j: (i, 0)),
                pl.BlockSpec((Kp, TN), lambda i, j: (0, j)),
                pl.BlockSpec((1, TN), lambda i, j: (0, j)),
                pl.BlockSpec((TM, TN), lambda i, j: (i, j)),
            ],
            out_specs=pl.BlockSpec((TM, TN), lambda i, j: (i, j)),
        ),
        compiler_params=pltpu.CompilerParams(
            dimension_semantics=("parallel", "parallel"),
            vmem_limit_bytes=_vmem_limit(),
        ),
        cost_estimate=pl.CostEstimate(flops=flops, transcendentals=0,
                                      bytes_accessed=bytes_acc),
    )(xb, wb, sh, rb)
    return out[:M] if Mp != M else out


# ----------------------------------------------------------------------------
# JAX glue: BN folding, weight packing
# ----------------------------------------------------------------------------
def fold_bn(bn, bias=None, eps=EPS):
    gamma, beta, mean, var = bn
    scale = gamma / jnp.sqrt(var + eps)
    shift = beta - mean * scale
    if bias is not None:
        shift = shift + bias * scale
    return scale, shift


def pointwise_weight(w):
    # torch (Cout, Cin, 1, 1) -> (Cin, Cout)
    return jnp.transpose(w[:, :, 0, 0], (1, 0))


def block_diag_weight_3x3(w, groups):
    # torch grouped (Cout, Cin/G, 3, 3) -> dense block-diagonal (3, 3, Cin, Cout).
    Cout, Cg, KH, KW = w.shape
    og = Cout // groups
    wt = jnp.transpose(w.reshape(groups, og, Cg, KH, KW),
                       (3, 4, 0, 2, 1))                      # (KH,KW,G,Cg,og)
    eye = jnp.eye(groups, dtype=w.dtype)
    dense = jnp.einsum('hwgco,gk->hwgcko', wt, eye)          # zero off-group blocks
    return dense.reshape(KH, KW, groups * Cg, groups * og)


# ----------------------------------------------------------------------------
# BottleNeckC forward (Pallas path)
# ----------------------------------------------------------------------------
def bottleneck_c_forward(x_nchw, params, *, stride, cardinality):
    x = jnp.transpose(x_nchw, (0, 2, 3, 1))            # NHWC
    N, H, W, Cin = x.shape
    inner = params["w1"].shape[0]
    Cout4 = params["w3"].shape[0]

    # conv1 (1x1, bias) + BN1 + ReLU -- BN scale folded into the weight.
    s1, sh1 = fold_bn(params["bn1"], bias=params["b1"])
    w1f = pointwise_weight(params["w1"]) * s1[None, :]
    y1 = fused_pointwise_conv(x.reshape(-1, Cin), w1f, sh1,
                              relu=True, out_dtype=jnp.bfloat16)
    Cp = y1.shape[1]                                    # channel-padded width
    y1 = y1.reshape(N, H, W, Cp)

    # conv2 (3x3 grouped, stride, pad=1) + BN2 + ReLU.
    # Grouped conv as block-diagonal dense weight; im2col fused in-kernel.
    s2, sh2 = fold_bn(params["bn2"])
    w2d = block_diag_weight_3x3(params["w2"], cardinality) * s2[None, None, None, :]
    w2d = jnp.pad(w2d, ((0, 0), (0, 0), (0, Cp - inner), (0, Cp - inner)))
    sh2p = jnp.pad(sh2, (0, Cp - inner))
    y2, Ho, Wo = fused_conv3x3_blockdiag(y1, w2d, sh2p, stride=stride,
                                         out_dtype=jnp.bfloat16)
    y2 = y2.reshape(N * Ho * Wo, Cp)

    # conv3 (1x1) + BN3 + shortcut + add + ReLU, all in a single kernel.
    s3, sh3 = fold_bn(params["bn3"])
    w3f = pointwise_weight(params["w3"]) * s3[None, :]
    if stride != 1 or Cin != Cout4:
        xs = x[:, ::stride, ::stride, :].reshape(-1, Cin)   # 1x1 stride = subsample
        ss, shs = fold_bn(params["bns"])
        wsf = pointwise_weight(params["ws"]) * ss[None, :]
        out = fused_dual_pointwise_conv(y2, w3f, xs, wsf, sh3 + shs)
    else:
        out = fused_pointwise_conv_residual(y2, w3f, sh3, x.reshape(-1, Cout4))

    out = out[:, :Cout4].reshape(N, Ho, Wo, Cout4)
    return jnp.transpose(out, (0, 3, 1, 2))             # back to NCHW


# ----------------------------------------------------------------------------
# Pure-JAX reference (NCHW, torch conv semantics) for validation
# ----------------------------------------------------------------------------
def _conv_ref(x, w, stride=1, padding=0, groups=1, bias=None):
    out = jax.lax.conv_general_dilated(
        x, w, (stride, stride), [(padding, padding)] * 2,
        feature_group_count=groups,
        dimension_numbers=("NCHW", "OIHW", "NCHW"))
    if bias is not None:
        out = out + bias[None, :, None, None]
    return out


def _bn_ref(x, bn):
    gamma, beta, mean, var = bn
    return ((x - mean[None, :, None, None])
            / jnp.sqrt(var[None, :, None, None] + EPS)
            * gamma[None, :, None, None] + beta[None, :, None, None])


def bottleneck_c_ref(x, p, *, stride, cardinality):
    cin = x.shape[1]
    cout4 = p["w3"].shape[0]
    y = jax.nn.relu(_bn_ref(_conv_ref(x, p["w1"], bias=p["b1"]), p["bn1"]))
    y = jax.nn.relu(_bn_ref(_conv_ref(y, p["w2"], stride=stride, padding=1,
                                      groups=cardinality), p["bn2"]))
    y = _bn_ref(_conv_ref(y, p["w3"]), p["bn3"])
    if stride != 1 or cin != cout4:
        sc = _bn_ref(_conv_ref(x, p["ws"], stride=stride), p["bns"])
    else:
        sc = x
    return jax.nn.relu(y + sc)


# ----------------------------------------------------------------------------
def make_params(key, in_channels, out_channels, cardinality, group_depth):
    inner = int(out_channels * group_depth / 64.0) * cardinality
    cout4 = out_channels * 4
    ks = jax.random.split(key, 9)

    def bn(k, c):
        k1, k2, k3, k4 = jax.random.split(k, 4)
        return (jax.random.uniform(k1, (c,), jnp.float32, 0.5, 1.5),   # gamma
                0.1 * jax.random.normal(k2, (c,), jnp.float32),        # beta
                0.1 * jax.random.normal(k3, (c,), jnp.float32),        # mean
                jax.random.uniform(k4, (c,), jnp.float32, 0.5, 1.5))   # var

    return {
        "w1": 0.1 * jax.random.normal(ks[0], (inner, in_channels, 1, 1), jnp.float32),
        "b1": 0.1 * jax.random.normal(ks[1], (inner,), jnp.float32),
        "bn1": bn(ks[2], inner),
        "w2": 0.1 * jax.random.normal(ks[3], (inner, inner // cardinality, 3, 3),
                                      jnp.float32),
        "bn2": bn(ks[4], inner),
        "w3": 0.1 * jax.random.normal(ks[5], (cout4, inner, 1, 1), jnp.float32),
        "bn3": bn(ks[6], cout4),
        "ws": 0.1 * jax.random.normal(ks[7], (cout4, in_channels, 1, 1), jnp.float32),
        "bns": bn(ks[8], cout4),
    }


if __name__ == "__main__":
    key = jax.random.PRNGKey(0)
    configs = [
        # projection shortcut (stride 2, channel change)
        dict(in_channels=16, out_channels=32, stride=2, cardinality=4,
             group_depth=4, hw=16, out_hw=8),
        # identity shortcut (stride 1, in == out*4)
        dict(in_channels=128, out_channels=32, stride=1, cardinality=4,
             group_depth=4, hw=8, out_hw=8),
    ]
    for i, cfg in enumerate(configs):
        kx, kp, key = jax.random.split(key, 3)
        x = jax.random.normal(kx, (2, cfg["in_channels"], cfg["hw"], cfg["hw"]),
                              jnp.float32)                       # NCHW
        params = make_params(kp, cfg["in_channels"], cfg["out_channels"],
                             cfg["cardinality"], cfg["group_depth"])

        fwd = jax.jit(functools.partial(bottleneck_c_forward,
                                        stride=cfg["stride"],
                                        cardinality=cfg["cardinality"]))
        out = jax.block_until_ready(fwd(x, params))
        ref = jax.block_until_ready(
            bottleneck_c_ref(x, params, stride=cfg["stride"],
                             cardinality=cfg["cardinality"]))

        expect = (2, cfg["out_channels"] * 4, cfg["out_hw"], cfg["out_hw"])
        assert out.shape == ref.shape == expect, (out.shape, ref.shape, expect)
        max_err = float(jnp.max(jnp.abs(out - ref)))
        ref_max = float(jnp.max(jnp.abs(ref)))
        # bf16 matmul operands with f32 accumulation -> bf16-level tolerance.
        tol = 5e-2 * max(ref_max, 1.0) + 5e-2
        assert max_err < tol, f"config {i}: mismatch {max_err} (tol {tol})"

    print("KERNEL_OK")
</pallas_src>

<mosaic_0001>
module attributes {stable_mosaic.version = 11 : i64} {
  func.func @_mm_shift_act_kernel(%arg0: i32, %arg1: i32, %arg2: i32, %arg3: memref<128x128xbf16, #tpu.memory_space<vmem>>, %arg4: memref<128x128xbf16, #tpu.memory_space<vmem>>, %arg5: memref<1x128xf32, #tpu.memory_space<vmem>>, %arg6: memref<128x128xbf16, #tpu.memory_space<vmem>>, %arg7: memref<128x128xf32, #tpu.memory_space<vmem>>) attributes {dimension_semantics = [#tpu.dimension_semantics<parallel>, #tpu.dimension_semantics<parallel>, #tpu.dimension_semantics<arbitrary>], iteration_bounds = array<i64: 4, 1, 1>, scalar_prefetch = 0 : i64, scratch_operands = 1 : i64, tpu.core_type = #tpu.core_type<tc>, window_params = [{transform_indices = @transform_0, window_bounds = array<i64: 128, 128>}, {transform_indices = @transform_1, window_bounds = array<i64: 128, 128>}, {transform_indices = @transform_2, window_bounds = array<i64: 1, 128>}, {transform_indices = @transform_3, window_bounds = array<i64: 128, 128>}]} {
    %c0_i32 = arith.constant 0 : i32
    %0 = arith.cmpi eq, %arg2, %c0_i32 : i32
    %1 = arith.extui %0 : i1 to i32
    %c0_i32_0 = arith.constant 0 : i32
    %2 = arith.cmpi ne, %1, %c0_i32_0 : i32
    scf.if %2 {
      %cst_10 = arith.constant 0.000000e+00 : f32
      %12 = vector.broadcast %cst_10 : f32 to vector<128x128xf32>
      %c0_11 = arith.constant 0 : index
      %c0_12 = arith.constant 0 : index
      %13 = vector.load %arg7[%c0_11, %c0_12] : memref<128x128xf32, #tpu.memory_space<vmem>>, vector<128x128xf32>
      tpu.vector_store %arg7[%c0_11, %c0_12], %12 {strides = array<i32>} : memref<128x128xf32, #tpu.memory_space<vmem>>, vector<128x128xf32>,
    } else {
    }
    %c0 = arith.constant 0 : index
    %c0_1 = arith.constant 0 : index
    %3 = vector.load %arg7[%c0, %c0_1] : memref<128x128xf32, #tpu.memory_space<vmem>>, vector<128x128xf32>
    %c0_2 = arith.constant 0 : index
    %c0_3 = arith.constant 0 : index
    %4 = vector.load %arg3[%c0_2, %c0_3] : memref<128x128xbf16, #tpu.memory_space<vmem>>, vector<128x128xbf16>
    %c0_4 = arith.constant 0 : index
    %c0_5 = arith.constant 0 : index
    %5 = vector.load %arg4[%c0_4, %c0_5] : memref<128x128xbf16, #tpu.memory_space<vmem>>, vector<128x128xbf16>
    %cst = arith.constant dense<0.000000e+00> : vector<128x128xf32>
    %6 = tpu.matmul %4, %5, %cst {dimension_numbers = #tpu.dot_dimension_numbers<[1], [0], [0], [1], [0, 0, 1, 1], [], []>} : vector<128x128xbf16>, vector<128x128xbf16>, vector<128x128xf32> -> vector<128x128xf32>
    %7 = arith.addf %3, %6 : vector<128x128xf32>
    %c0_6 = arith.constant 0 : index
    %c0_7 = arith.constant 0 : index
    %8 = vector.load %arg7[%c0_6, %c0_7] : memref<128x128xf32, #tpu.memory_space<vmem>>, vector<128x128xf32>
    tpu.vector_store %arg7[%c0_6, %c0_7], %7 {strides = array<i32>} : memref<128x128xf32, #tpu.memory_space<vmem>>, vector<128x128xf32>,
    %c0_i32_8 = arith.constant 0 : i32
    %9 = arith.cmpi eq, %arg2, %c0_i32_8 : i32
    %10 = arith.extui %9 : i1 to i32
    %c0_i32_9 = arith.constant 0 : i32
    %11 = arith.cmpi ne, %10, %c0_i32_9 : i32
    scf.if %11 {
      %c0_10 = arith.constant 0 : index
      %c0_11 = arith.constant 0 : index
      %12 = vector.load %arg7[%c0_10, %c0_11] : memref<128x128xf32, #tpu.memory_space<vmem>>, vector<128x128xf32>
      %c0_12 = arith.constant 0 : index
      %c0_13 = arith.constant 0 : index
      %13 = vector.load %arg5[%c0_12, %c0_13] : memref<1x128xf32, #tpu.memory_space<vmem>>, vector<1x128xf32>
      %14 = vector.broadcast %13 : vector<1x128xf32> to vector<128x128xf32>
      %15 = arith.addf %12, %14 : vector<128x128xf32>
      %cst_14 = arith.constant 0.000000e+00 : f32
      %16 = vector.broadcast %cst_14 : f32 to vector<128x128xf32>
      %17 = arith.maximumf %15, %16 : vector<128x128xf32>
      %18 = arith.truncf %17 : vector<128x128xf32> to vector<128x128xbf16>
      %c0_15 = arith.constant 0 : index
      %c0_16 = arith.constant 0 : index
      %19 = vector.load %arg6[%c0_15, %c0_16] : memref<128x128xbf16, #tpu.memory_space<vmem>>, vector<128x128xbf16>
      tpu.vector_store %arg6[%c0_15, %c0_16], %18 {strides = array<i32>} : memref<128x128xbf16, #tpu.memory_space<vmem>>, vector<128x128xbf16>,
    } else {
    }
    return
  }
  func.func @transform_0(%arg0: i32, %arg1: i32, %arg2: i32) -> (i32, i32) {
    %c0_i32 = arith.constant 0 : i32
    return %arg0, %arg2 : i32, i32
  }
  func.func @transform_1(%arg0: i32, %arg1: i32, %arg2: i32) -> (i32, i32) {
    %c0_i32 = arith.constant 0 : i32
    return %arg2, %arg1 : i32, i32
  }
  func.func @transform_2(%arg0: i32, %arg1: i32, %arg2: i32) -> (i32, i32) {
    %c0_i32 = arith.constant 0 : i32
    %c0_i32_0 = arith.constant 0 : i32
    return %c0_i32, %arg1 : i32, i32
  }
  func.func @transform_3(%arg0: i32, %arg1: i32, %arg2: i32) -> (i32, i32) {
    %c0_i32 = arith.constant 0 : i32
    return %arg0, %arg1 : i32, i32
  }
}

module attributes {stable_mosaic.version = 11 : i64} {
  func.func @_dual_mm_shift_relu_kernel(%arg0: i32, %arg1: i32, %arg2: memref<128x128xbf16, #tpu.memory_space<vmem>>, %arg3: memref<128x128xbf16, #tpu.memory_space<vmem>>, %arg4: memref<128x128xbf16, #tpu.memory_space<vmem>>, %arg5: memref<128x128xbf16, #tpu.memory_space<vmem>>, %arg6: memref<1x128xf32, #tpu.memory_space<vmem>>, %arg7: memref<128x128xf32, #tpu.memory_space<vmem>>) attributes {dimension_semantics = [#tpu.dimension_semantics<parallel>, #tpu.dimension_semantics<parallel>], iteration_bounds = array<i64: 1, 1>, scalar_prefetch = 0 : i64, scratch_operands = 0 : i64, tpu.core_type = #tpu.core_type<tc>, window_params = [{transform_indices = @transform_0, window_bounds = array<i64: 128, 128>}, {transform_indices = @transform_1, window_bounds = array<i64: 128, 128>}, {transform_indices = @transform_2, window_bounds = array<i64: 128, 128>}, {transform_indices = @transform_3, window_bounds = array<i64: 128, 128>}, {transform_indices = @transform_4, window_bounds = array<i64: 1, 128>}, {transform_indices = @transform_5, window_bounds = array<i64: 128, 128>}]} {
    %c0 = arith.constant 0 : index
    %c0_0 = arith.constant 0 : index
    %0 = vector.load %arg2[%c0, %c0_0] : memref<128x128xbf16, #tpu.memory_space<vmem>>, vector<128x128xbf16>
    %c0_1 = arith.constant 0 : index
    %c0_2 = arith.constant 0 : index
    %1 = vector.load %arg3[%c0_1, %c0_2] : memref<128x128xbf16, #tpu.memory_space<vmem>>, vector<128x128xbf16>
    %cst = arith.constant dense<0.000000e+00> : vector<128x128xf32>
    %2 = tpu.matmul %0, %1, %cst {dimension_numbers = #tpu.dot_dimension_numbers<[1], [0], [0], [1], [0, 0, 1, 1], [], []>} : vector<128x128xbf16>, vector<128x128xbf16>, vector<128x128xf32> -> vector<128x128xf32>
    %c0_3 = arith.constant 0 : index
    %c0_4 = arith.constant 0 : index
    %3 = vector.load %arg4[%c0_3, %c0_4] : memref<128x128xbf16, #tpu.memory_space<vmem>>, vector<128x128xbf16>
    %c0_5 = arith.constant 0 : index
    %c0_6 = arith.constant 0 : index
    %4 = vector.load %arg5[%c0_5, %c0_6] : memref<128x128xbf16, #tpu.memory_space<vmem>>, vector<128x128xbf16>
    %cst_7 = arith.constant dense<0.000000e+00> : vector<128x128xf32>
    %5 = tpu.matmul %3, %4, %cst_7 {dimension_numbers = #tpu.dot_dimension_numbers<[1], [0], [0], [1], [0, 0, 1, 1], [], []>} : vector<128x128xbf16>, vector<128x128xbf16>, vector<128x128xf32> -> vector<128x128xf32>
    %6 = arith.addf %2, %5 : vector<128x128xf32>
    %c0_8 = arith.constant 0 : index
    %c0_9 = arith.constant 0 : index
    %7 = vector.load %arg6[%c0_8, %c0_9] : memref<1x128xf32, #tpu.memory_space<vmem>>, vector<1x128xf32>
    %8 = vector.broadcast %7 : vector<1x128xf32> to vector<128x128xf32>
    %9 = arith.addf %6, %8 : vector<128x128xf32>
    %cst_10 = arith.constant 0.000000e+00 : f32
    %10 = vector.broadcast %cst_10 : f32 to vector<128x128xf32>
    %11 = arith.maximumf %9, %10 : vector<128x128xf32>
    %c0_11 = arith.constant 0 : index
    %c0_12 = arith.constant 0 : index
    %12 = vector.load %arg7[%c0_11, %c0_12] : memref<128x128xf32, #tpu.memory_space<vmem>>, vector<128x128xf32>
    tpu.vector_store %arg7[%c0_11, %c0_12], %11 {strides = array<i32>} : memref<128x128xf32, #tpu.memory_space<vmem>>, vector<128x128xf32>,
    return
  }
  func.func @transform_0(%arg0: i32, %arg1: i32) -> (i32, i32) {
    %c0_i32 = arith.constant 0 : i32
    %c0_i32_0 = arith.constant 0 : i32
    return %arg0, %c0_i32 : i32, i32
  }
  func.func @transform_1(%arg0: i32, %arg1: i32) -> (i32, i32) {
    %c0_i32 = arith.constant 0 : i32
    %c0_i32_0 = arith.constant 0 : i32
    return %c0_i32, %arg1 : i32, i32
  }
  func.func @transform_2(%arg0: i32, %arg1: i32) -> (i32, i32) {
    %c0_i32 = arith.constant 0 : i32
    %c0_i32_0 = arith.constant 0 : i32
    return %arg0, %c0_i32 : i32, i32
  }
  func.func @transform_3(%arg0: i32, %arg1: i32) -> (i32, i32) {
    %c0_i32 = arith.constant 0 : i32
    %c0_i32_0 = arith.constant 0 : i32
    return %c0_i32, %arg1 : i32, i32
  }
  func.func @transform_4(%arg0: i32, %arg1: i32) -> (i32, i32) {
    %c0_i32 = arith.constant 0 : i32
    %c0_i32_0 = arith.constant 0 : i32
    return %c0_i32, %arg1 : i32, i32
  }
  func.func @transform_5(%arg0: i32, %arg1: i32) -> (i32, i32) {
    %c0_i32 = arith.constant 0 : i32
    return %arg0, %arg1 : i32, i32
  }
}

module attributes {stable_mosaic.version = 11 : i64} {
  func.func @_conv3x3_blockdiag_kernel(%arg0: i32, %arg1: memref<1x2x2x9x9x128xbf16, #tpu.memory_space<vmem>>, %arg2: memref<3x3x128x128xbf16, #tpu.memory_space<vmem>>, %arg3: memref<1x128xf32, #tpu.memory_space<vmem>>, %arg4: memref<1x8x8x128xbf16, #tpu.memory_space<vmem>>) attributes {dimension_semantics = [#tpu.dimension_semantics<parallel>], iteration_bounds = array<i64: 2>, scalar_prefetch = 0 : i64, scratch_operands = 0 : i64, tpu.core_type = #tpu.core_type<tc>, window_params = [{transform_indices = @transform_0, window_bounds = array<i64: 1, 2, 2, 9, 9, 128>}, {pipeline_mode = #tpu.pipeline_mode<synchronous>, transform_indices = @transform_1, window_bounds = array<i64: 3, 3, 128, 128>}, {pipeline_mode = #tpu.pipeline_mode<synchronous>, transform_indices = @transform_2, window_bounds = array<i64: 1, 128>}, {transform_indices = @transform_3, window_bounds = array<i64: 1, 8, 8, 128>}]} {
    %cst = arith.constant 0.000000e+00 : f32
    %0 = vector.broadcast %cst : f32 to vector<64x128xf32>
    %c0 = arith.constant 0 : index
    %c0_0 = arith.constant 0 : index
    %c0_1 = arith.constant 0 : index
    %c0_2 = arith.constant 0 : index
    %c0_3 = arith.constant 0 : index
    %c0_4 = arith.constant 0 : index
    %1 = vector.load %arg1[%c0, %c0_0, %c0_1, %c0_2, %c0_3, %c0_4] : memref<1x2x2x9x9x128xbf16, #tpu.memory_space<vmem>>, vector<1x1x1x8x8x128xbf16>
    %2 = vector.shape_cast %1 : vector<1x1x1x8x8x128xbf16> to vector<8x8x128xbf16>
    %3 = vector.shape_cast %2 : vector<8x8x128xbf16> to vector<64x128xbf16>
    %c0_5 = arith.constant 0 : index
    %c0_6 = arith.constant 0 : index
    %c0_7 = arith.constant 0 : index
    %c0_8 = arith.constant 0 : index
    %4 = vector.load %arg2[%c0_5, %c0_6, %c0_7, %c0_8] : memref<3x3x128x128xbf16, #tpu.memory_space<vmem>>, vector<1x1x128x128xbf16>
    %5 = vector.shape_cast %4 : vector<1x1x128x128xbf16> to vector<128x128xbf16>
    %cst_9 = arith.constant dense<0.000000e+00> : vector<64x128xf32>
    %6 = tpu.matmul %3, %5, %cst_9 {dimension_numbers = #tpu.dot_dimension_numbers<[1], [0], [0], [1], [0, 0, 1, 1], [], []>} : vector<64x128xbf16>, vector<128x128xbf16>, vector<64x128xf32> -> vector<64x128xf32>
    %7 = arith.addf %0, %6 : vector<64x128xf32>
    %c0_10 = arith.constant 0 : index
    %c0_11 = arith.constant 0 : index
    %c1 = arith.constant 1 : index
    %c0_12 = arith.constant 0 : index
    %c0_13 = arith.constant 0 : index
    %c0_14 = arith.constant 0 : index
    %8 = vector.load %arg1[%c0_10, %c0_11, %c1, %c0_12, %c0_13, %c0_14] : memref<1x2x2x9x9x128xbf16, #tpu.memory_space<vmem>>, vector<1x1x1x8x8x128xbf16>
    %9 = vector.shape_cast %8 : vector<1x1x1x8x8x128xbf16> to vector<8x8x128xbf16>
    %10 = vector.shape_cast %9 : vector<8x8x128xbf16> to vector<64x128xbf16>
    %c0_15 = arith.constant 0 : index
    %c1_16 = arith.constant 1 : index
    %c0_17 = arith.constant 0 : index
    %c0_18 = arith.constant 0 : index
    %11 = vector.load %arg2[%c0_15, %c1_16, %c0_17, %c0_18] : memref<3x3x128x128xbf16, #tpu.memory_space<vmem>>, vector<1x1x128x128xbf16>
    %12 = vector.shape_cast %11 : vector<1x1x128x128xbf16> to vector<128x128xbf16>
    %cst_19 = arith.constant dense<0.000000e+00> : vector<64x128xf32>
    %13 = tpu.matmul %10, %12, %cst_19 {dimension_numbers = #tpu.dot_dimension_numbers<[1], [0], [0], [1], [0, 0, 1, 1], [], []>} : vector<64x128xbf16>, vector<128x128xbf16>, vector<64x128xf32> -> vector<64x128xf32>
    %14 = arith.addf %7, %13 : vector<64x128xf32>
    %c0_20 = arith.constant 0 : index
    %c0_21 = arith.constant 0 : index
    %c0_22 = arith.constant 0 : index
    %c0_23 = arith.constant 0 : index
    %c1_24 = arith.constant 1 : index
    %c0_25 = arith.constant 0 : index
    %15 = vector.load %arg1[%c0_20, %c0_21, %c0_22, %c0_23, %c1_24, %c0_25] : memref<1x2x2x9x9x128xbf16, #tpu.memory_space<vmem>>, vector<1x1x1x8x8x128xbf16>
    %16 = vector.shape_cast %15 : vector<1x1x1x8x8x128xbf16> to vector<8x8x128xbf16>
    %17 = vector.shape_cast %16 : vector<8x8x128xbf16> to vector<64x128xbf16>
    %c0_26 = arith.constant 0 : index
    %c2 = arith.constant 2 : index
    %c0_27 = arith.constant 0 : index
    %c0_28 = arith.constant 0 : index
    %18 = vector.load %arg2[%c0_26, %c2, %c0_27, %c0_28] : memref<3x3x128x128xbf16, #tpu.memory_space<vmem>>, vector<1x1x128x128xbf16>
    %19 = vector.shape_cast %18 : vector<1x1x128x128xbf16> to vector<128x128xbf16>
    %cst_29 = arith.constant dense<0.000000e+00> : vector<64x128xf32>
    %20 = tpu.matmul %17, %19, %cst_29 {dimension_numbers = #tpu.dot_dimension_numbers<[1], [0], [0], [1], [0, 0, 1, 1], [], []>} : vector<64x128xbf16>, vector<128x128xbf16>, vector<64x128xf32> -> vector<64x128xf32>
    %21 = arith.addf %14, %20 : vector<64x128xf32>
    %c0_30 = arith.constant 0 : index
    %c1_31 = arith.constant 1 : index
    %c0_32 = arith.constant 0 : index
    %c0_33 = arith.constant 0 : index
    %c0_34 = arith.constant 0 : index
    %c0_35 = arith.constant 0 : index
    %22 = vector.load %arg1[%c0_30, %c1_31, %c0_32, %c0_33, %c0_34, %c0_35] : memref<1x2x2x9x9x128xbf16, #tpu.memory_space<vmem>>, vector<1x1x1x8x8x128xbf16>
    %23 = vector.shape_cast %22 : vector<1x1x1x8x8x128xbf16> to vector<8x8x128xbf16>
    %24 = vector.shape_cast %23 : vector<8x8x128xbf16> to vector<64x128xbf16>
    %c1_36 = arith.constant 1 : index
    %c0_37 = arith.constant 0 : index
    %c0_38 = arith.constant 0 : index
    %c0_39 = arith.constant 0 : index
    %25 = vector.load %arg2[%c1_36, %c0_37, %c0_38, %c0_39] : memref<3x3x128x128xbf16, #tpu.memory_space<vmem>>, vector<1x1x128x128xbf16>
    %26 = vector.shape_cast %25 : vector<1x1x128x128xbf16> to vector<128x128xbf16>
    %cst_40 = arith.constant dense<0.000000e+00> : vector<64x128xf32>
    %27 = tpu.matmul %24, %26, %cst_40 {dimension_numbers = #tpu.dot_dimension_numbers<[1], [0], [0], [1], [0, 0, 1, 1], [], []>} : vector<64x128xbf16>, vector<128x128xbf16>, vector<64x128xf32> -> vector<64x128xf32>
    %28 = arith.addf %21, %27 : vector<64x128xf32>
    %c0_41 = arith.constant 0 : index
    %c1_42 = arith.constant 1 : index
    %c1_43 = arith.constant 1 : index
    %c0_44 = arith.constant 0 : index
    %c0_45 = arith.constant 0 : index
    %c0_46 = arith.constant 0 : index
    %29 = vector.load %arg1[%c0_41, %c1_42, %c1_43, %c0_44, %c0_45, %c0_46] : memref<1x2x2x9x9x128xbf16, #tpu.memory_space<vmem>>, vector<1x1x1x8x8x128xbf16>
    %30 = vector.shape_cast %29 : vector<1x1x1x8x8x128xbf16> to vector<8x8x128xbf16>
    %31 = vector.shape_cast %30 : vector<8x8x128xbf16> to vector<64x128xbf16>
    %c1_47 = arith.constant 1 : index
    %c1_48 = arith.constant 1 : index
    %c0_49 = arith.constant 0 : index
    %c0_50 = arith.constant 0 : index
    %32 = vector.load %arg2[%c1_47, %c1_48, %c0_49, %c0_50] : memref<3x3x128x128xbf16, #tpu.memory_space<vmem>>, vector<1x1x128x128xbf16>
    %33 = vector.shape_cast %32 : vector<1x1x128x128xbf16> to vector<128x128xbf16>
    %cst_51 = arith.constant dense<0.000000e+00> : vector<64x128xf32>
    %34 = tpu.matmul %31, %33, %cst_51 {dimension_numbers = #tpu.dot_dimension_numbers<[1], [0], [0], [1], [0, 0, 1, 1], [], []>} : vector<64x128xbf16>, vector<128x128xbf16>, vector<64x128xf32> -> vector<64x128xf32>
    %35 = arith.addf %28, %34 : vector<64x128xf32>
    %c0_52 = arith.constant 0 : index
    %c1_53 = arith.constant 1 : index
    %c0_54 = arith.constant 0 : index
    %c0_55 = arith.constant 0 : index
    %c1_56 = arith.constant 1 : index
    %c0_57 = arith.constant 0 : index
    %36 = vector.load %arg1[%c0_52, %c1_53, %c0_54, %c0_55, %c1_56, %c0_57] : memref<1x2x2x9x9x128xbf16, #tpu.memory_space<vmem>>, vector<1x1x1x8x8x128xbf16>
    %37 = vector.shape_cast %36 : vector<1x1x1x8x8x128xbf16> to vector<8x8x128xbf16>
    %38 = vector.shape_cast %37 : vector<8x8x128xbf16> to vector<64x128xbf16>
    %c1_58 = arith.constant 1 : index
    %c2_59 = arith.constant 2 : index
    %c0_60 = arith.constant 0 : index
    %c0_61 = arith.constant 0 : index
    %39 = vector.load %arg2[%c1_58, %c2_59, %c0_60, %c0_61] : memref<3x3x128x128xbf16, #tpu.memory_space<vmem>>, vector<1x1x128x128xbf16>
    %40 = vector.shape_cast %39 : vector<1x1x128x128xbf16> to vector<128x128xbf16>
    %cst_62 = arith.constant dense<0.000000e+00> : vector<64x128xf32>
    %41 = tpu.matmul %38, %40, %cst_62 {dimension_numbers = #tpu.dot_dimension_numbers<[1], [0], [0], [1], [0, 0, 1, 1], [], []>} : vector<64x128xbf16>, vector<128x128xbf16>, vector<64x128xf32> -> vector<64x128xf32>
    %42 = arith.addf %35, %41 : vector<64x128xf32>
    %c0_63 = arith.constant 0 : index
    %c0_64 = arith.constant 0 : index
    %c0_65 = arith.constant 0 : index
    %c1_66 = arith.constant 1 : index
    %c0_67 = arith.constant 0 : index
    %c0_68 = arith.constant 0 : index
    %43 = vector.load %arg1[%c0_63, %c0_64, %c0_65, %c1_66, %c0_67, %c0_68] : memref<1x2x2x9x9x128xbf16, #tpu.memory_space<vmem>>, vector<1x1x1x8x8x128xbf16>
    %44 = vector.shape_cast %43 : vector<1x1x1x8x8x128xbf16> to vector<8x8x128xbf16>
    %45 = vector.shape_cast %44 : vector<8x8x128xbf16> to vector<64x128xbf16>
    %c2_69 = arith.constant 2 : index
    %c0_70 = arith.constant 0 : index
    %c0_71 = arith.constant 0 : index
    %c0_72 = arith.constant 0 : index
    %46 = vector.load %arg2[%c2_69, %c0_70, %c0_71, %c0_72] : memref<3x3x128x128xbf16, #tpu.memory_space<vmem>>, vector<1x1x128x128xbf16>
    %47 = vector.shape_cast %46 : vector<1x1x128x128xbf16> to vector<128x128xbf16>
    %cst_73 = arith.constant dense<0.000000e+00> : vector<64x128xf32>
    %48 = tpu.matmul %45, %47, %cst_73 {dimension_numbers = #tpu.dot_dimension_numbers<[1], [0], [0], [1], [0, 0, 1, 1], [], []>} : vector<64x128xbf16>, vector<128x128xbf16>, vector<64x128xf32> -> vector<64x128xf32>
    %49 = arith.addf %42, %48 : vector<64x128xf32>
    %c0_74 = arith.constant 0 : index
    %c0_75 = arith.constant 0 : index
    %c1_76 = arith.constant 1 : index
    %c1_77 = arith.constant 1 : index
    %c0_78 = arith.constant 0 : index
    %c0_79 = arith.constant 0 : index
    %50 = vector.load %arg1[%c0_74, %c0_75, %c1_76, %c1_77, %c0_78, %c0_79] : memref<1x2x2x9x9x128xbf16, #tpu.memory_space<vmem>>, vector<1x1x1x8x8x128xbf16>
    %51 = vector.shape_cast %50 : vector<1x1x1x8x8x128xbf16> to vector<8x8x128xbf16>
    %52 = vector.shape_cast %51 : vector<8x8x128xbf16> to vector<64x128xbf16>
    %c2_80 = arith.constant 2 : index
    %c1_81 = arith.constant 1 : index
    %c0_82 = arith.constant 0 : index
    %c0_83 = arith.constant 0 : index
    %53 = vector.load %arg2[%c2_80, %c1_81, %c0_82, %c0_83] : memref<3x3x128x128xbf16, #tpu.memory_space<vmem>>, vector<1x1x128x128xbf16>
    %54 = vector.shape_cast %53 : vector<1x1x128x128xbf16> to vector<128x128xbf16>
    %cst_84 = arith.constant dense<0.000000e+00> : vector<64x128xf32>
    %55 = tpu.matmul %52, %54, %cst_84 {dimension_numbers = #tpu.dot_dimension_numbers<[1], [0], [0], [1], [0, 0, 1, 1], [], []>} : vector<64x128xbf16>, vector<128x128xbf16>, vector<64x128xf32> -> vector<64x128xf32>
    %56 = arith.addf %49, %55 : vector<64x128xf32>
    %c0_85 = arith.constant 0 : index
    %c0_86 = arith.constant 0 : index
    %c0_87 = arith.constant 0 : index
    %c1_88 = arith.constant 1 : index
    %c1_89 = arith.constant 1 : index
    %c0_90 = arith.constant 0 : index
    %57 = vector.load %arg1[%c0_85, %c0_86, %c0_87, %c1_88, %c1_89, %c0_90] : memref<1x2x2x9x9x128xbf16, #tpu.memory_space<vmem>>, vector<1x1x1x8x8x128xbf16>
    %58 = vector.shape_cast %57 : vector<1x1x1x8x8x128xbf16> to vector<8x8x128xbf16>
    %59 = vector.shape_cast %58 : vector<8x8x128xbf16> to vector<64x128xbf16>
    %c2_91 = arith.constant 2 : index
    %c2_92 = arith.constant 2 : index
    %c0_93 = arith.constant 0 : index
    %c0_94 = arith.constant 0 : index
    %60 = vector.load %arg2[%c2_91, %c2_92, %c0_93, %c0_94] : memref<3x3x128x128xbf16, #tpu.memory_space<vmem>>, vector<1x1x128x128xbf16>
    %61 = vector.shape_cast %60 : vector<1x1x128x128xbf16> to vector<128x128xbf16>
    %cst_95 = arith.constant dense<0.000000e+00> : vector<64x128xf32>
    %62 = tpu.matmul %59, %61, %cst_95 {dimension_numbers = #tpu.dot_dimension_numbers<[1], [0], [0], [1], [0, 0, 1, 1], [], []>} : vector<64x128xbf16>, vector<128x128xbf16>, vector<64x128xf32> -> vector<64x128xf32>
    %63 = arith.addf %56, %62 : vector<64x128xf32>
    %c0_96 = arith.constant 0 : index
    %c0_97 = arith.constant 0 : index
    %64 = vector.load %arg3[%c0_96, %c0_97] : memref<1x128xf32, #tpu.memory_space<vmem>>, vector<1x128xf32>
    %65 = vector.broadcast %64 : vector<1x128xf32> to vector<64x128xf32>
    %66 = arith.addf %63, %65 : vector<64x128xf32>
    %cst_98 = arith.constant 0.000000e+00 : f32
    %67 = vector.broadcast %cst_98 : f32 to vector<64x128xf32>
    %68 = arith.maximumf %66, %67 : vector<64x128xf32>
    %69 = vector.shape_cast %68 : vector<64x128xf32> to vector<8x8x128xf32>
    %70 = arith.truncf %69 : vector<8x8x128xf32> to vector<8x8x128xbf16>
    %c0_99 = arith.constant 0 : index
    %c0_100 = arith.constant 0 : index
    %c0_101 = arith.constant 0 : index
    %c0_102 = arith.constant 0 : index
    %71 = vector.load %arg4[%c0_99, %c0_100, %c0_101, %c0_102] : memref<1x8x8x128xbf16, #tpu.memory_space<vmem>>, vector<1x8x8x128xbf16>
    %72 = vector.shape_cast %71 : vector<1x8x8x128xbf16> to vector<8x8x128xbf16>
    %73 = vector.shape_cast %70 : vector<8x8x128xbf16> to vector<1x8x8x128xbf16>
    tpu.vector_store %arg4[%c0_99, %c0_100, %c0_101, %c0_102], %73 {strides = array<i32>} : memref<1x8x8x128xbf16, #tpu.memory_space<vmem>>, vector<1x8x8x128xbf16>,
    return
  }
  func.func @transform_0(%arg0: i32) -> (i32, i32, i32, i32, i32, i32) {
    %c0_i32 = arith.constant 0 : i32
    %c0_i32_0 = arith.constant 0 : i32
    %c0_i32_1 = arith.constant 0 : i32
    %c0_i32_2 = arith.constant 0 : i32
    %c0_i32_3 = arith.constant 0 : i32
    %c0_i32_4 = arith.constant 0 : i32
    return %arg0, %c0_i32, %c0_i32_0, %c0_i32_1, %c0_i32_2, %c0_i32_3 : i32, i32, i32, i32, i32, i32
  }
  func.func @transform_1(%arg0: i32) -> (i32, i32, i32, i32) {
    %c0_i32 = arith.constant 0 : i32
    %c0_i32_0 = arith.constant 0 : i32
    %c0_i32_1 = arith.constant 0 : i32
    %c0_i32_2 = arith.constant 0 : i32
    %c0_i32_3 = arith.constant 0 : i32
    return %c0_i32, %c0_i32_0, %c0_i32_1, %c0_i32_2 : i32, i32, i32, i32
  }
  func.func @transform_2(%arg0: i32) -> (i32, i32) {
    %c0_i32 = arith.constant 0 : i32
    %c0_i32_0 = arith.constant 0 : i32
    %c0_i32_1 = arith.constant 0 : i32
    return %c0_i32, %c0_i32_0 : i32, i32
  }
  func.func @transform_3(%arg0: i32) -> (i32, i32, i32, i32) {
    %c0_i32 = arith.constant 0 : i32
    %c0_i32_0 = arith.constant 0 : i32
    %c0_i32_1 = arith.constant 0 : i32
    %c0_i32_2 = arith.constant 0 : i32
    return %arg0, %c0_i32, %c0_i32_0, %c0_i32_1 : i32, i32, i32, i32
  }
}

</mosaic_0001>

<bundles_post_ra>
// kernel: bottleneck_c_forward.3
= control target key start
LH: loop header
LB: loop body
LE: loop exit
PB: predicated region body
PF: predicated region fallthrough
CT: control target
= control target key end

     0   :  { %s935_s12 = smov 0   ;;  %s937_s13 = smov 0   ;;  %s1015_s0 = inlined_call_operand.vmem [shape: bf16[512,128], index: 0, kind: input, shape index: {}]   ;;  %s1016_s1 = inlined_call_operand.vmem [shape: bf16[128,128], index: 1, kind: input, shape index: {}]   ;;  %s1017_s2 = inlined_call_operand.vmem [shape: f32[1,128], index: 2, kind: input, shape index: {}]   ;;  %s1018_s3 = inlined_call_operand.vmem [shape: bf16[512,128], index: 3, kind: output, shape index: {}]  }
   0x1   :  { %s939_s14 = smov 0  }
   0x2 LB: > { %s32_s15 = sadd.s32 1, %s909_s13  ;;  %p708_p0 = scmp.ge.s32.totalorder %s913_s14, 1  ;;  %s913_s14 = sphi %s939_s14, %s13_s14   ;;  %s909_s13 = sphi %s937_s13, %s1020_s13   ;;  %s905_s12 = sphi %s935_s12, %s1019_s12  }
   0x3   : > { %p34_p1 = scmp.ge.s32.totalorder %s32_s15, 4  ;;  %p188_p2 = scmp.lt.s32.totalorder %s913_s14, 5 }
   0x5   : > { %s1022_s15 = smov (%p34_p1, %s32_s15), 0  ;;  %p189_p3 = pnand %p708_p0, %p188_p2 }
   0x6   : > { %s709_s24 = sshll.u32 (!%p189_p3), %s905_s12, 4 }
   0x7   : > { %192 = sbr.rel (%p189_p3) target bundleno = 209 (0xd1), region = 32  ;;  %p230_p4 = scmp.lt.s32.totalorder (!%p189_p3), %s709_s24, 63 }
   0xc   : > { %v794_v0 = vld [vmem:[%s1016_s1 + $0x38] sm:$0xff]  ;;  %v793_v1 = vld [vmem:[%s1016_s1 + $0x30] sm:$0xff]  ;;  %v792_v2 = vld [vmem:[%s1016_s1 + $0x28] sm:$0xff]  ;;  %s1024_s24 = smov (!%p230_p4, %s709_s24), 63 }
   0xd   : > { %423 = vmatpush.bf16.msra.mxu0 %v794_v0  ;;  %842 = vmatpush.bf16.msra.mxu1 %v794_v0  ;;  %v791_v3 = vld [vmem:[%s1016_s1 + $0x20] sm:$0xff]  ;;  %v790_v4 = vld [vmem:[%s1016_s1 + $0x18] sm:$0xff]  ;;  %v789_v5 = vld [vmem:[%s1016_s1 + $0x10] sm:$0xff]  ;;  %s710_s4 = sshll.u32 %s1024_s24, 2 }
   0xe   : > { %843 = vmatpush.bf16.msra.mxu2 %v794_v0  ;;  %844 = vmatpush.bf16.msra.mxu3 %v794_v0  ;;  %v788_v6 = vld [vmem:[%s1016_s1 + $0x8] sm:$0xff]  ;;  %v787_v7 = vld [vmem:[%s1016_s1] sm:$0xff]  ;;  %s236_s9 = scalar_lea.vmem %s1015_s0, %s710_s4  ;;  %s996_s17 = scalar_lea.vmem %s1018_s3, %s710_s4 }
   0xf   : > { %v779_v8 = vld [vmem:[%s236_s9] sm:$0xff]  ;;  %v781_v9 = vld [vmem:[%s236_s9 + $0x10] sm:$0xff]  ;;  %v780_v12 = vld [vmem:[%s236_s9 + $0x8] sm:$0xff] }
  0x10   : > { %v783_v10 = vld [vmem:[%s236_s9 + $0x20] sm:$0xff]  ;;  %v785_v11 = vld [vmem:[%s236_s9 + $0x30] sm:$0xff]  ;;  %v782_v13 = vld [vmem:[%s236_s9 + $0x18] sm:$0xff] }
  0x11   : > { %424 = vmatpush.bf16.msra.mxu0 %v793_v1  ;;  %845 = vmatpush.bf16.msra.mxu1 %v793_v1  ;;  %v784_v14 = vld [vmem:[%s236_s9 + $0x28] sm:$0xff]  ;;  %v786_v15 = vld [vmem:[%s236_s9 + $0x38] sm:$0xff]  ;;  %v890_v18 = vld [vmem:[%s1017_s2] ss:$0 sm:$0xff] }
  0x12   : > { %846 = vmatpush.bf16.msra.mxu2 %v793_v1  ;;  %847 = vmatpush.bf16.msra.mxu3 %v793_v1 }
  0x15   : > { %425 = vmatpush.bf16.msra.mxu0 %v792_v2  ;;  %848 = vmatpush.bf16.msra.mxu1 %v792_v2 }
  0x16   : > { %849 = vmatpush.bf16.msra.mxu2 %v792_v2  ;;  %850 = vmatpush.bf16.msra.mxu3 %v792_v2 }
  0x19   : > { %426 = vmatpush.bf16.msra.mxu0 %v791_v3  ;;  %851 = vmatpush.bf16.msra.mxu1 %v791_v3 }
  0x1a   : > { %852 = vmatpush.bf16.msra.mxu2 %v791_v3  ;;  %853 = vmatpush.bf16.msra.mxu3 %v791_v3 }
  0x1d   : > { %427 = vmatpush.bf16.msra.mxu0 %v790_v4  ;;  %854 = vmatpush.bf16.msra.mxu1 %v790_v4 }
  0x1e   : > { %855 = vmatpush.bf16.msra.mxu2 %v790_v4  ;;  %856 = vmatpush.bf16.msra.mxu3 %v790_v4 }
  0x21   : > { %428 = vmatpush.bf16.msra.mxu0 %v789_v5  ;;  %857 = vmatpush.bf16.msra.mxu1 %v789_v5 }
  0x22   : > { %858 = vmatpush.bf16.msra.mxu2 %v789_v5  ;;  %859 = vmatpush.bf16.msra.mxu3 %v789_v5 }
  0x25   : > { %429 = vmatpush.bf16.msra.mxu0 %v788_v6  ;;  %860 = vmatpush.bf16.msra.mxu1 %v788_v6 }
  0x26   : > { %861 = vmatpush.bf16.msra.mxu2 %v788_v6  ;;  %862 = vmatpush.bf16.msra.mxu3 %v788_v6 }
  0x29   : > { %430 = vmatpush.bf16.msra.mxu0 %v787_v7  ;;  %863 = vmatpush.bf16.msra.mxu1 %v787_v7 }
  0x2a   : > { %864 = vmatpush.bf16.msra.mxu2 %v787_v7  ;;  %865 = vmatpush.bf16.msra.mxu3 %v787_v7 }
  0x2c   : > { %431 = vmatmul.bf16.vlgmr.msra.gmra.mxu0 %v779_v8  ;;  %441 = vmatmul.bf16.vlgmr.msra.gmra.mxu1 %v781_v9 }
  0x2d   : > { %451 = vmatmul.bf16.vlgmr.msra.gmra.mxu2 %v783_v10  ;;  %461 = vmatmul.bf16.vlgmr.msra.gmra.mxu3 %v785_v11 }
  0x3c   : > { %436 = vmatmul.bf16.gmra.mxu0 %v780_v12  ;;  %446 = vmatmul.bf16.gmra.mxu1 %v782_v13 }
  0x3d   : > { %456 = vmatmul.bf16.gmra.mxu2 %v784_v14  ;;  %466 = vmatmul.bf16.gmra.mxu3 %v786_v15 }
  0xa9   : > { %v432_v16 = vpop.f32.mrf.mxu0  ;;  %v442_v17 = vpop.f32.mrf.mxu1 }
  0xaa   : > { %v527_v19 = vadd.f32 %v890_v18, %v432_v16  ;;  %v531_v20 = vadd.f32 %v890_v18, %v442_v17 }
  0xac   : > { %v543_v27 = vmax.f32 %v527_v19, 0.0  ;;  %v547_v28 = vmax.f32 %v531_v20, 0.0 }
  0xb0   : > { %v452_v21 = vpop.f32.mrf.mxu2  ;;  %v462_v22 = vpop.f32.mrf.mxu3 }
  0xb1   : > { %v434_v23 = vpop.f32.mrf.mxu0  ;;  %v444_v24 = vpop.f32.mrf.mxu1  ;;  %v535_v33 = vadd.f32 %v890_v18, %v452_v21  ;;  %v539_v34 = vadd.f32 %v890_v18, %v462_v22 }
  0xb2   : > { %v528_v25 = vadd.f32 %v890_v18, %v434_v23  ;;  %v532_v26 = vadd.f32 %v890_v18, %v444_v24 }
  0xb3   : > { %v551_v41 = vmax.f32 %v535_v33, 0.0  ;;  %v555_v42 = vmax.f32 %v539_v34, 0.0 }
  0xb4   : > { %v544_v29 = vmax.f32 %v528_v25, 0.0  ;;  %v548_v30 = vmax.f32 %v532_v26, 0.0 }
  0xb6   : > { %v798_v31 = vpack.c.bf16 %v544_v29, %v543_v27  ;;  %v808_v32 = vpack.c.bf16 %v548_v30, %v547_v28 }
  0xb8   : > { %799 = vst [vmem:[%s996_s17] sm:$0xff] %v798_v31   ;;  %v454_v35 = vpop.f32.mrf.mxu2  ;;  %v464_v36 = vpop.f32.mrf.mxu3 }
  0xb9   : > { %836 = vst [vmem:[%s996_s17 + $0x10] sm:$0xff] %v808_v32   ;;  %v536_v37 = vadd.f32 %v890_v18, %v454_v35  ;;  %v540_v38 = vadd.f32 %v890_v18, %v464_v36  ;;  %v437_v39 = vpop.f32.mrf.mxu0  ;;  %v447_v40 = vpop.f32.mrf.mxu1 }
  0xba   : > { %v529_v47 = vadd.f32 %v890_v18, %v437_v39  ;;  %v533_v48 = vadd.f32 %v890_v18, %v447_v40 }
  0xbb   : > { %v552_v43 = vmax.f32 %v536_v37, 0.0  ;;  %v556_v44 = vmax.f32 %v540_v38, 0.0 }
  0xbc   : > { %v545_v55 = vmax.f32 %v529_v47, 0.0  ;;  %v549_v56 = vmax.f32 %v533_v48, 0.0 }
  0xbd   : > { %v818_v45 = vpack.c.bf16 %v552_v43, %v551_v41  ;;  %v828_v46 = vpack.c.bf16 %v556_v44, %v555_v42 }
  0xbf   : > { %838 = vst [vmem:[%s996_s17 + $0x20] sm:$0xff] %v818_v45  }
  0xc0   : > { %840 = vst [vmem:[%s996_s17 + $0x30] sm:$0xff] %v828_v46   ;;  %v457_v49 = vpop.f32.mrf.mxu2  ;;  %v467_v50 = vpop.f32.mrf.mxu3 }
  0xc1   : > { %v439_v51 = vpop.f32.mrf.mxu0  ;;  %v449_v52 = vpop.f32.mrf.mxu1  ;;  %v537_v61 = vadd.f32 %v890_v18, %v457_v49  ;;  %v541_v62 = vadd.f32 %v890_v18, %v467_v50 }
  0xc2   : > { %v530_v53 = vadd.f32 %v890_v18, %v439_v51  ;;  %v534_v54 = vadd.f32 %v890_v18, %v449_v52 }
  0xc3   : > { %v553_v3 = vmax.f32 %v537_v61, 0.0  ;;  %v557_v4 = vmax.f32 %v541_v62, 0.0 }
  0xc4   : > { %v546_v57 = vmax.f32 %v530_v53, 0.0  ;;  %v550_v58 = vmax.f32 %v534_v54, 0.0 }
  0xc6   : > { %v803_v59 = vpack.c.bf16 %v546_v57, %v545_v55  ;;  %v813_v60 = vpack.c.bf16 %v550_v58, %v549_v56 }
  0xc8   : > { %835 = vst [vmem:[%s996_s17 + $0x8] sm:$0xff] %v803_v59   ;;  %v459_v63 = vpop.f32.mrf.mxu2  ;;  %v469_v0 = vpop.f32.mrf.mxu3 }
  0xc9   : > { %837 = vst [vmem:[%s996_s17 + $0x18] sm:$0xff] %v813_v60   ;;  %v538_v1 = vadd.f32 %v890_v18, %v459_v63  ;;  %v542_v2 = vadd.f32 %v890_v18, %v469_v0 }
  0xcb   : > { %v554_v5 = vmax.f32 %v538_v1, 0.0  ;;  %v558_v6 = vmax.f32 %v542_v2, 0.0 }
  0xcd   : > { %v823_v7 = vpack.c.bf16 %v554_v5, %v553_v3  ;;  %v833_v8 = vpack.c.bf16 %v558_v6, %v557_v4 }
  0xcf   : > { %839 = vst [vmem:[%s996_s17 + $0x28] sm:$0xff] %v823_v7  }
  0xd0   : > { %841 = vst [vmem:[%s996_s17 + $0x38] sm:$0xff] %v833_v8  }
  0xd1 PF: > { %s13_s14 = sadd.s32 1, %s913_s14   ;;  %s1019_s12 = smov %s909_s13 }
  0xd2   : > { %p10_p5 = scmp.ge.s32.totalorder %s13_s14, 6   ;;  %s1020_s13 = smov %s1022_s15 }
  0xd4   :  { %12 = sbr.rel (!%p10_p5) target bundleno = 2 (0x2), region = 76 }

// kernel: bottleneck_c_forward.5
= control target key start
LH: loop header
LB: loop body
LE: loop exit
PB: predicated region body
PF: predicated region fallthrough
CT: control target
= control target key end

     0   :  { %s804_s0 = inlined_call_operand.vmem [shape: bf16[128,128], index: 0, kind: input, shape index: {}]   ;;  %s805_s1 = inlined_call_operand.vmem [shape: bf16[128,128], index: 1, kind: input, shape index: {}]   ;;  %s806_s2 = inlined_call_operand.vmem [shape: bf16[128,128], index: 2, kind: input, shape index: {}]   ;;  %s807_s3 = inlined_call_operand.vmem [shape: bf16[128,128], index: 3, kind: input, shape index: {}]   ;;  %s808_s4 = inlined_call_operand.vmem [shape: f32[1,128], index: 4, kind: input, shape index: {}]   ;;  %s809_s5 = inlined_call_operand.hbm [shape: f32[128,128], index: 5, kind: output, shape index: {}]  }
   0x1   :  { %v604_v0 = vld [vmem:[%s807_s3 + $0x38] sm:$0xff]  ;;  %v603_v2 = vld [vmem:[%s807_s3 + $0x30] sm:$0xff]  ;;  %v602_v4 = vld [vmem:[%s807_s3 + $0x28] sm:$0xff] }
   0x2   :  { %v588_v1 = vld [vmem:[%s805_s1 + $0x38] sm:$0xff]  ;;  %181 = vmatpush.bf16.msra.mxu0 %v604_v0  ;;  %605 = vmatpush.bf16.msra.mxu2 %v604_v0  ;;  %v587_v3 = vld [vmem:[%s805_s1 + $0x30] sm:$0xff]  ;;  %v586_v5 = vld [vmem:[%s805_s1 + $0x28] sm:$0xff] }
   0x3   :  { %326 = vmatpush.bf16.msra.mxu1 %v588_v1  ;;  %613 = vmatpush.bf16.msra.mxu3 %v588_v1 }
   0x6   :  { %182 = vmatpush.bf16.msra.mxu0 %v603_v2  ;;  %606 = vmatpush.bf16.msra.mxu2 %v603_v2 }
   0x7   :  { %327 = vmatpush.bf16.msra.mxu1 %v587_v3  ;;  %614 = vmatpush.bf16.msra.mxu3 %v587_v3 }
   0x8   :  { %10 = vsyncpa [#allocation3], 0  ;;  %v601_v6 = vld [vmem:[%s807_s3 + $0x20] sm:$0xff]  ;;  %v600_v8 = vld [vmem:[%s807_s3 + $0x18] sm:$0xff]  ;;  %s652_s7 = smov 128   ;;  %s653_s8 = smov 8  }
   0x9   :  { %v585_v7 = vld [vmem:[%s805_s1 + $0x20] sm:$0xff]  ;;  %v584_v9 = vld [vmem:[%s805_s1 + $0x18] sm:$0xff]  ;;  %v599_v10 = vld [vmem:[%s807_s3 + $0x10] sm:$0xff] }
   0xa   :  { %183 = vmatpush.bf16.msra.mxu0 %v602_v4  ;;  %607 = vmatpush.bf16.msra.mxu2 %v602_v4  ;;  %v583_v11 = vld [vmem:[%s805_s1 + $0x10] sm:$0xff]  ;;  %v598_v12 = vld [vmem:[%s807_s3 + $0x8] sm:$0xff]  ;;  %v597_v14 = vld [vmem:[%s807_s3] sm:$0xff] }
   0xb   :  { %328 = vmatpush.bf16.msra.mxu1 %v586_v5  ;;  %615 = vmatpush.bf16.msra.mxu3 %v586_v5  ;;  %v582_v13 = vld [vmem:[%s805_s1 + $0x8] sm:$0xff]  ;;  %v581_v15 = vld [vmem:[%s805_s1] sm:$0xff]  ;;  %v591_v24 = vld [vmem:[%s806_s2 + $0x10] sm:$0xff]  ;;  %s433_s1 = sshll.u32 %s809_s5, 4  ;;  %s434_s1 = int_to_ptr.hbm [resolvable:$true] %s433_s1 }
   0xc   :  { %v589_v16 = vld [vmem:[%s806_s2] sm:$0xff]  ;;  %v590_v20 = vld [vmem:[%s806_s2 + $0x8] sm:$0xff]  ;;  %v595_v25 = vld [vmem:[%s806_s2 + $0x30] sm:$0xff] }
   0xd   :  { %v593_v17 = vld [vmem:[%s806_s2 + $0x20] sm:$0xff]  ;;  %v594_v21 = vld [vmem:[%s806_s2 + $0x28] sm:$0xff]  ;;  %v575_v26 = vld [vmem:[%s804_s0 + $0x10] sm:$0xff] }
   0xe   :  { %184 = vmatpush.bf16.msra.mxu0 %v601_v6  ;;  %608 = vmatpush.bf16.msra.mxu2 %v601_v6  ;;  %v573_v18 = vld [vmem:[%s804_s0] sm:$0xff]  ;;  %v574_v22 = vld [vmem:[%s804_s0 + $0x8] sm:$0xff]  ;;  %v579_v27 = vld [vmem:[%s804_s0 + $0x30] sm:$0xff] }
   0xf   :  { %329 = vmatpush.bf16.msra.mxu1 %v585_v7  ;;  %616 = vmatpush.bf16.msra.mxu3 %v585_v7  ;;  %v577_v19 = vld [vmem:[%s804_s0 + $0x20] sm:$0xff]  ;;  %v578_v23 = vld [vmem:[%s804_s0 + $0x28] sm:$0xff]  ;;  %v592_v28 = vld [vmem:[%s806_s2 + $0x18] sm:$0xff] }
  0x10   :  { %v596_v29 = vld [vmem:[%s806_s2 + $0x38] sm:$0xff]  ;;  %v783_v33 = vld [vmem:[%s808_s4] ss:$0 sm:$0xff] }
  0x11   :  { %v576_v30 = vld [vmem:[%s804_s0 + $0x18] sm:$0xff] }
  0x12   :  { %185 = vmatpush.bf16.msra.mxu0 %v600_v8  ;;  %609 = vmatpush.bf16.msra.mxu2 %v600_v8  ;;  %v580_v31 = vld [vmem:[%s804_s0 + $0x38] sm:$0xff]  ;;  %s651_s0 = smov [#allocation2]  }
  0x13   :  { %330 = vmatpush.bf16.msra.mxu1 %v584_v9  ;;  %617 = vmatpush.bf16.msra.mxu3 %v584_v9  ;;  %s431_s2 = sshll.u32 %s651_s0, 4  ;;  %s432_s2 = int_to_ptr.vmem [resolvable:$true] %s431_s2 }
  0x16   :  { %186 = vmatpush.bf16.msra.mxu0 %v599_v10  ;;  %610 = vmatpush.bf16.msra.mxu2 %v599_v10 }
  0x17   :  { %331 = vmatpush.bf16.msra.mxu1 %v583_v11  ;;  %618 = vmatpush.bf16.msra.mxu3 %v583_v11 }
  0x1a   :  { %187 = vmatpush.bf16.msra.mxu0 %v598_v12  ;;  %611 = vmatpush.bf16.msra.mxu2 %v598_v12 }
  0x1b   :  { %332 = vmatpush.bf16.msra.mxu1 %v582_v13  ;;  %619 = vmatpush.bf16.msra.mxu3 %v582_v13 }
  0x1e   :  { %188 = vmatpush.bf16.msra.mxu0 %v597_v14  ;;  %612 = vmatpush.bf16.msra.mxu2 %v597_v14 }
  0x1f   :  { %333 = vmatpush.bf16.msra.mxu1 %v581_v15  ;;  %620 = vmatpush.bf16.msra.mxu3 %v581_v15 }
  0x21   :  { %189 = vmatmul.bf16.vlgmr.msra.gmra.mxu0 %v589_v16  ;;  %209 = vmatmul.bf16.vlgmr.msra.gmra.mxu2 %v593_v17 }
  0x22   :  { %334 = vmatmul.bf16.vlgmr.msra.gmra.mxu1 %v573_v18  ;;  %354 = vmatmul.bf16.vlgmr.msra.gmra.mxu3 %v577_v19 }
  0x31   :  { %194 = vmatmul.bf16.gmra.mxu0 %v590_v20  ;;  %214 = vmatmul.bf16.gmra.mxu2 %v594_v21 }
  0x32   :  { %339 = vmatmul.bf16.gmra.mxu1 %v574_v22  ;;  %359 = vmatmul.bf16.gmra.mxu3 %v578_v23 }
  0x41   :  { %199 = vmatmul.bf16.gmra.mxu0 %v591_v24  ;;  %219 = vmatmul.bf16.gmra.mxu2 %v595_v25 }
  0x42   :  { %344 = vmatmul.bf16.gmra.mxu1 %v575_v26  ;;  %364 = vmatmul.bf16.gmra.mxu3 %v579_v27 }
  0x51   :  { %204 = vmatmul.bf16.gmra.mxu0 %v592_v28  ;;  %224 = vmatmul.bf16.gmra.mxu2 %v596_v29 }
  0x52   :  { %349 = vmatmul.bf16.gmra.mxu1 %v576_v30  ;;  %369 = vmatmul.bf16.gmra.mxu3 %v580_v31 }
  0x9e   :  { %v190_v32 = vpop.f32.mrf.mxu0 }
  0x9f   :  { %v335_v34 = vpop.f32.mrf.mxu1 }
  0xa0   :  { %v336_v35 = vadd.f32 %v335_v34, %v190_v32 }
  0xa2   :  { %v379_v36 = vadd.f32 %v783_v33, %v336_v35 }
  0xa4   :  { %v395_v37 = vmax.f32 %v379_v36, 0.0  ;;  %v210_v38 = vpop.f32.mrf.mxu2 }
  0xa5   :  { %v355_v39 = vpop.f32.mrf.mxu3 }
  0xa6   :  { %411 = vst [vmem:[#allocation2] sm:$0xff] %v395_v37  ;;  %v356_v40 = vadd.f32 %v355_v39, %v210_v38  ;;  %v192_v41 = vpop.f32.mrf.mxu0 }
  0xa7   :  { %v337_v42 = vpop.f32.mrf.mxu1 }
  0xa8   :  { %v387_v43 = vadd.f32 %v783_v33, %v356_v40  ;;  %v338_v44 = vadd.f32 %v337_v42, %v192_v41 }
  0xaa   :  { %v403_v45 = vmax.f32 %v387_v43, 0.0  ;;  %v380_v46 = vadd.f32 %v783_v33, %v338_v44 }
  0xac   :  { %419 = vst [vmem:[#allocation2 + $0x40] sm:$0xff] %v403_v45  ;;  %v396_v47 = vmax.f32 %v380_v46, 0.0  ;;  %v212_v48 = vpop.f32.mrf.mxu2 }
  0xad   :  { %v357_v49 = vpop.f32.mrf.mxu3 }
  0xae   :  { %412 = vst [vmem:[#allocation2 + $0x8] sm:$0xff] %v396_v47  ;;  %v358_v50 = vadd.f32 %v357_v49, %v212_v48  ;;  %v195_v51 = vpop.f32.mrf.mxu0 }
  0xaf   :  { %v340_v52 = vpop.f32.mrf.mxu1 }
  0xb0   :  { %v388_v53 = vadd.f32 %v783_v33, %v358_v50  ;;  %v341_v54 = vadd.f32 %v340_v52, %v195_v51 }
  0xb2   :  { %v404_v55 = vmax.f32 %v388_v53, 0.0  ;;  %v381_v56 = vadd.f32 %v783_v33, %v341_v54 }
  0xb4   :  { %420 = vst [vmem:[#allocation2 + $0x48] sm:$0xff] %v404_v55  ;;  %v397_v57 = vmax.f32 %v381_v56, 0.0  ;;  %v215_v58 = vpop.f32.mrf.mxu2 }
  0xb5   :  { %v360_v59 = vpop.f32.mrf.mxu3 }
  0xb6   :  { %413 = vst [vmem:[#allocation2 + $0x10] sm:$0xff] %v397_v57  ;;  %v361_v60 = vadd.f32 %v360_v59, %v215_v58  ;;  %v197_v61 = vpop.f32.mrf.mxu0 }
  0xb7   :  { %v342_v62 = vpop.f32.mrf.mxu1 }
  0xb8   :  { %v389_v63 = vadd.f32 %v783_v33, %v361_v60  ;;  %v343_v0 = vadd.f32 %v342_v62, %v197_v61 }
  0xba   :  { %v405_v1 = vmax.f32 %v389_v63, 0.0  ;;  %v382_v2 = vadd.f32 %v783_v33, %v343_v0 }
  0xbc   :  { %421 = vst [vmem:[#allocation2 + $0x50] sm:$0xff] %v405_v1  ;;  %v398_v3 = vmax.f32 %v382_v2, 0.0  ;;  %v217_v4 = vpop.f32.mrf.mxu2 }
  0xbd   :  { %v362_v5 = vpop.f32.mrf.mxu3 }
  0xbe   :  { %414 = vst [vmem:[#allocation2 + $0x18] sm:$0xff] %v398_v3  ;;  %v363_v6 = vadd.f32 %v362_v5, %v217_v4  ;;  %v200_v7 = vpop.f32.mrf.mxu0 }
  0xbf   :  { %v345_v8 = vpop.f32.mrf.mxu1 }
  0xc0   :  { %v390_v9 = vadd.f32 %v783_v33, %v363_v6  ;;  %v346_v10 = vadd.f32 %v345_v8, %v200_v7 }
  0xc2   :  { %v406_v11 = vmax.f32 %v390_v9, 0.0  ;;  %v383_v12 = vadd.f32 %v783_v33, %v346_v10 }
  0xc4   :  { %422 = vst [vmem:[#allocation2 + $0x58] sm:$0xff] %v406_v11  ;;  %v399_v13 = vmax.f32 %v383_v12, 0.0  ;;  %v220_v14 = vpop.f32.mrf.mxu2 }
  0xc5   :  { %v365_v15 = vpop.f32.mrf.mxu3 }
  0xc6   :  { %415 = vst [vmem:[#allocation2 + $0x20] sm:$0xff] %v399_v13  ;;  %v366_v16 = vadd.f32 %v365_v15, %v220_v14  ;;  %v202_v17 = vpop.f32.mrf.mxu0 }
  0xc7   :  { %v347_v18 = vpop.f32.mrf.mxu1 }
  0xc8   :  { %v391_v19 = vadd.f32 %v783_v33, %v366_v16  ;;  %v348_v20 = vadd.f32 %v347_v18, %v202_v17 }
  0xca   :  { %v407_v21 = vmax.f32 %v391_v19, 0.0  ;;  %v384_v22 = vadd.f32 %v783_v33, %v348_v20 }
  0xcc   :  { %423 = vst [vmem:[#allocation2 + $0x60] sm:$0xff] %v407_v21  ;;  %v400_v23 = vmax.f32 %v384_v22, 0.0  ;;  %v222_v24 = vpop.f32.mrf.mxu2 }
  0xcd   :  { %v367_v25 = vpop.f32.mrf.mxu3 }
  0xce   :  { %416 = vst [vmem:[#allocation2 + $0x28] sm:$0xff] %v400_v23  ;;  %v368_v26 = vadd.f32 %v367_v25, %v222_v24  ;;  %v205_v27 = vpop.f32.mrf.mxu0 }
  0xcf   :  { %v350_v28 = vpop.f32.mrf.mxu1 }
  0xd0   :  { %v392_v29 = vadd.f32 %v783_v33, %v368_v26  ;;  %v351_v30 = vadd.f32 %v350_v28, %v205_v27 }
  0xd2   :  { %v408_v31 = vmax.f32 %v392_v29, 0.0  ;;  %v385_v32 = vadd.f32 %v783_v33, %v351_v30 }
  0xd4   :  { %424 = vst [vmem:[#allocation2 + $0x68] sm:$0xff] %v408_v31  ;;  %v401_v34 = vmax.f32 %v385_v32, 0.0  ;;  %v225_v35 = vpop.f32.mrf.mxu2 }
  0xd5   :  { %v370_v36 = vpop.f32.mrf.mxu3 }
  0xd6   :  { %417 = vst [vmem:[#allocation2 + $0x30] sm:$0xff] %v401_v34  ;;  %v371_v37 = vadd.f32 %v370_v36, %v225_v35  ;;  %v207_v38 = vpop.f32.mrf.mxu0 }
  0xd7   :  { %v352_v39 = vpop.f32.mrf.mxu1 }
  0xd8   :  { %v393_v40 = vadd.f32 %v783_v33, %v371_v37  ;;  %v353_v41 = vadd.f32 %v352_v39, %v207_v38 }
  0xda   :  { %v409_v42 = vmax.f32 %v393_v40, 0.0  ;;  %v386_v43 = vadd.f32 %v783_v33, %v353_v41 }
  0xdc   :  { %425 = vst [vmem:[#allocation2 + $0x70] sm:$0xff] %v409_v42  ;;  %v402_v44 = vmax.f32 %v386_v43, 0.0  ;;  %v227_v45 = vpop.f32.mrf.mxu2 }
  0xdd   :  { %v372_v46 = vpop.f32.mrf.mxu3 }
  0xde   :  { %418 = vst [vmem:[#allocation2 + $0x38] sm:$0xff] %v402_v44  ;;  %v373_v47 = vadd.f32 %v372_v46, %v227_v45 }
  0xe0   :  { %v394_v48 = vadd.f32 %v783_v33, %v373_v47 }
  0xe2   :  { %v410_v49 = vmax.f32 %v394_v48, 0.0 }
  0xe4   :  { %426 = vst [vmem:[#allocation2 + $0x78] sm:$0xff] %v410_v49 }
  0xe5   :  { %439 = dma.vmem_to_hbm [thread:$0]  %s432_s2, 2048, %s434_s1, [#allocation3], %s652_s7, %s652_s7, %s653_s8  }
  0xe6   :  { %649 = dma.done.wait [#allocation3], 2048  }
  0xe7   :  { %650 = vsyncadd [#allocation3], 4294965248 }
  0xe8   :  { %444 = vsyncpa [#allocation3], 1 }

// kernel: bottleneck_c_forward.4
= control target key start
LH: loop header
LB: loop body
LE: loop exit
PB: predicated region body
PF: predicated region fallthrough
CT: control target
= control target key end

     0   :  { %s2563_s12 = smov 0   ;;  %s3002_s0 = inlined_call_operand.vmem [shape: bf16[2,2,2,9,9,128], index: 0, kind: input, shape index: {}]   ;;  %s3003_s1 = inlined_call_operand.vmem [shape: bf16[3,3,128,128], index: 1, kind: input, shape index: {}]   ;;  %s3004_s2 = inlined_call_operand.vmem [shape: f32[1,128], index: 2, kind: input, shape index: {}]   ;;  %s3005_s3 = inlined_call_operand.vmem [shape: bf16[2,8,8,128], index: 3, kind: output, shape index: {}]  }
   0x1 LB: > { %s1795_s13 = sadd.s32 4294967295, %s2541_s12   ;;  %p1799_p0 = scmp.ge.s32.totalorder %s2541_s12, 1  ;;  %s2541_s12 = sphi %s2563_s12, %s13_s12  }
   0x2   : > { %p137_p1 = scmp.lt.s32.totalorder %s2541_s12, 3 }
   0x4   : > { %p138_p2 = pnand %p1799_p0, %p137_p1 }
   0x5   : > { %p161_p3 = scmp.lt.s32.totalorder (!%p138_p2), %s1795_s13, 1 }
   0x6   : > { %141 = sbr.rel (%p138_p2) target bundleno = 336 (0x150), region = 32 }
   0xb   : > { %v2413_v0 = vld [vmem:[%s3003_s1 + $0x78] sm:$0xff]  ;;  %v2412_v2 = vld [vmem:[%s3003_s1 + $0x70] sm:$0xff]  ;;  %s3009_s13 = smov (!%p161_p3, %s1795_s13), 1  ;;  %v2411_v6 = vld [vmem:[%s3003_s1 + $0x68] sm:$0xff]  ;;  %vm439_vm0 = vsmask.f32 3328 }
   0xc   : > { %v2421_v1 = vld [vmem:[%s3003_s1 + $0xb8] sm:$0xff]  ;;  %2509 = vmatpush.bf16.msra.mxu1 %v2413_v0  ;;  %293 = vmatpush.bf16.msra.mxu0 %v2413_v0  ;;  %v2420_v3 = vld [vmem:[%s3003_s1 + $0xb0] sm:$0xff]  ;;  %s2525_s24 = smul.u32 288, %s3009_s13  ;;  %v2419_v7 = vld [vmem:[%s3003_s1 + $0xa8] sm:$0xff]  ;;  %vm440_vm1 = vsmask.f32 7440 }
   0xd   : > { %635 = vmatpush.bf16.msra.mxu2 %v2421_v1  ;;  %v2433_v4 = vld [vmem:[%s3003_s1 + $0xf8] sm:$0xff]  ;;  %v2432_v5 = vld [vmem:[%s3003_s1 + $0xf0] sm:$0xff]  ;;  %v2431_v8 = vld [vmem:[%s3003_s1 + $0xe8] sm:$0xff]  ;;  %s2389_s18 = sshll.u32 %s3009_s13, 5 }
   0xe   : > { %770 = vmatpush.bf16.msra.mxu3 %v2433_v4  ;;  %s2598_s4 = scalar_lea.vmem %s3002_s0, %s2525_s24  ;;  %v2410_v10 = vld [vmem:[%s3003_s1 + $0x60] sm:$0xff]  ;;  %v2409_v23 = vld [vmem:[%s3003_s1 + $0x58] sm:$0xff]  ;;  %v2408_v31 = vld [vmem:[%s3003_s1 + $0x50] sm:$0xff]  ;;  %s2978_s21 = scalar_lea.vmem %s3005_s3, %s2389_s18 }
   0xf   : > { %v423_v9 = vld [vmem:[%s2598_s4] sm:$0xf]  ;;  %v425_v11 = vld [vmem:[%s2598_s4 + $0x8] sm:$0xf]  ;;  %v424_v16 = vld [vmem:[%s2598_s4 + $0x4] sm:$0x1] }
  0x10   : > { %2510 = vmatpush.bf16.msra.mxu1 %v2412_v2  ;;  %294 = vmatpush.bf16.msra.mxu0 %v2412_v2  ;;  %v2418_v12 = vld [vmem:[%s3003_s1 + $0xa0] sm:$0xff]  ;;  %v443_v13 = vshrl.u32 %v423_v9, 16  ;;  %v446_v14 = vshll.u32 %v423_v9, 16  ;;  %v457_v15 = vshrl.u32 %v425_v11, 16  ;;  %v426_v17 = vld [vmem:[%s2598_s4 + $0xc] sm:$0x1]  ;;  %vm2635_vm2 = vmor %vm439_vm0, %vm440_vm1 }
  0x11   : > { %636 = vmatpush.bf16.msra.mxu2 %v2420_v3  ;;  %v460_v18 = vshll.u32 %v425_v11, 16  ;;  %v2430_v19 = vld [vmem:[%s3003_s1 + $0xe0] sm:$0xff]  ;;  %v2417_v25 = vld [vmem:[%s3003_s1 + $0x98] sm:$0xff]  ;;  %v452_v27 = vshll.u32 %v424_v16, 16  ;;  %v466_v28 = vshll.u32 %v426_v17, 16  ;;  %v2416_v32 = vld [vmem:[%s3003_s1 + $0x90] sm:$0xff] }
  0x12   : > { %771 = vmatpush.bf16.msra.mxu3 %v2432_v5  ;;  %v445_v20 = vrot.slane %v443_v13, 4  ;;  %v448_v21 = vrot.slane %v446_v14, 5  ;;  %v459_v22 = vrot.slane %v457_v15, 4  ;;  %v2429_v30 = vld [vmem:[%s3003_s1 + $0xd8] sm:$0xff]  ;;  %v427_v37 = vld [vmem:[%s2598_s4 + $0x10] sm:$0xf] }
  0x13   : > { %v462_v24 = vrot.slane %v460_v18, 5  ;;  %v454_v34 = vrot.slane %v452_v27, 5  ;;  %v468_v36 = vrot.slane %v466_v28, 5  ;;  %v429_v39 = vld [vmem:[%s2598_s4 + $0x18] sm:$0xf]  ;;  %v2428_v40 = vld [vmem:[%s3003_s1 + $0xd0] sm:$0xff] }
  0x14   : > { %2511 = vmatpush.bf16.msra.mxu1 %v2411_v6  ;;  %295 = vmatpush.bf16.msra.mxu0 %v2411_v6  ;;  %v449_v26 = vor.u32 %v448_v21, %v445_v20  ;;  %v2407_v41 = vld [vmem:[%s3003_s1 + $0x48] sm:$0xff]  ;;  %v471_v42 = vshrl.u32 %v427_v37, 16  ;;  %v474_v43 = vshll.u32 %v427_v37, 16  ;;  %v485_v47 = vshrl.u32 %v429_v39, 16  ;;  %v2406_v49 = vld [vmem:[%s3003_s1 + $0x40] sm:$0xff]  ;;  %v2401_v52 = vld [vmem:[%s3003_s1 + $0x38] sm:$0xff] }
  0x15   : > { %637 = vmatpush.bf16.msra.mxu2 %v2419_v7  ;;  %v463_v29 = vor.u32 %v462_v24, %v459_v22  ;;  %v2415_v44 = vld [vmem:[%s3003_s1 + $0x88] sm:$0xff]  ;;  %v488_v48 = vshll.u32 %v429_v39, 16  ;;  %v2404_v51 = vld [vmem:[%s2598_s4 + $0x6c] sm:$0xf0]  ;;  %v2414_v54 = vld [vmem:[%s3003_s1 + $0x80] sm:$0xff] }
  0x16   : > { %772 = vmatpush.bf16.msra.mxu3 %v2431_v8  ;;  %v450_v33 = vrot.slane %v449_v26, 4  ;;  %v1837_v50 = vld [vmem:[%s2598_s4 + $0x68] sm:$0xf]  ;;  %v2402_v56 = vld [vmem:[%s2598_s4 + $0x4c] sm:$0xf0]  ;;  %v473_v60 = vrot.slane %v471_v42, 4 }
  0x17   : > { %v464_v35 = vrot.slane %v463_v29, 4  ;;  %v2427_v53 = vld [vmem:[%s3003_s1 + $0xc8] sm:$0xff]  ;;  %v428_v59 = vld [vmem:[%s2598_s4 + $0x14] sm:$0x1]  ;;  %v476_v61 = vrot.slane %v474_v43, 5  ;;  %v487_v62 = vrot.slane %v485_v47, 4  ;;  %v1838_v3 = vor.u32 %v2404_v51, %v1837_v50 }
  0x18   : > { %2512 = vmatpush.bf16.msra.mxu1 %v2410_v10  ;;  %296 = vmatpush.bf16.msra.mxu0 %v2410_v10  ;;  %v455_v45 = vsel %vm2635_vm2, %v450_v33, %v454_v34  ;;  %v1829_v55 = vld [vmem:[%s2598_s4 + $0x48] sm:$0xf]  ;;  %v490_v63 = vrot.slane %v488_v48, 5  ;;  %v2445_v0 = vld [vmem:[%s3003_s1 + $0x138] sm:$0xff]  ;;  %v2426_v6 = vld [vmem:[%s3003_s1 + $0xc0] sm:$0xff]  ;;  %v480_v9 = vshll.u32 %v428_v59, 16 }
  0x19   : > { %638 = vmatpush.bf16.msra.mxu2 %v2418_v12  ;;  %v469_v46 = vsel %vm2635_vm2, %v464_v35, %v468_v36  ;;  %v571_v57 = vunpack.c.l.b16 %v455_v45  ;;  %v2465_v1 = vld [vmem:[%s3003_s1 + $0x1b8] sm:$0xff]  ;;  %v1830_v4 = vor.u32 %v2402_v56, %v1829_v55  ;;  %v1997_v7 = vld [vmem:[%s2598_s4 + $0x90] sm:$0xf]  ;;  %v477_v11 = vor.u32 %v476_v61, %v473_v60  ;;  %v2399_v18 = vld [vmem:[%s3003_s1 + $0x28] sm:$0xff] }
  0x1a   : > { %773 = vmatpush.bf16.msra.mxu3 %v2430_v19  ;;  %v572_v58 = vunpack.c.l.b16 %v469_v46  ;;  %v430_v2 = vld [vmem:[%s2598_s4 + $0x1c] sm:$0x1]  ;;  %v2422_v8 = vld [vmem:[%s2598_s4 + $0x94] sm:$0xf0]  ;;  %v2400_v10 = vld [vmem:[%s3003_s1 + $0x30] sm:$0xff]  ;;  %v491_v12 = vor.u32 %v490_v63, %v487_v62  ;;  %v482_v19 = vrot.slane %v480_v9, 5 }
  0x1b   : > { %v494_v13 = vshll.u32 %v430_v2, 16  ;;  %v2477_v14 = vld [vmem:[%s3003_s1 + $0x1f8] sm:$0xff]  ;;  %v2444_v15 = vld [vmem:[%s3003_s1 + $0x130] sm:$0xff]  ;;  %v1998_v17 = vor.u32 %v2422_v8, %v1997_v7  ;;  %v478_v20 = vrot.slane %v477_v11, 4  ;;  %v431_v24 = vld [vmem:[%s2598_s4 + $0x20] sm:$0xf] }
  0x1c   : > { %2513 = vmatpush.bf16.msra.mxu1 %v2409_v23  ;;  %297 = vmatpush.bf16.msra.mxu0 %v2409_v23  ;;  %v579_v5 = vpack.c.b16 %v572_v58, %v571_v57  ;;  %v2464_v16 = vld [vmem:[%s3003_s1 + $0x1b0] sm:$0xff]  ;;  %v492_v21 = vrot.slane %v491_v12, 4  ;;  %v2463_v26 = vld [vmem:[%s3003_s1 + $0x1a8] sm:$0xff]  ;;  %v499_v28 = vshrl.u32 %v431_v24, 16  ;;  %v502_v29 = vshll.u32 %v431_v24, 16  ;;  %v2442_v36 = vld [vmem:[%s3003_s1 + $0x120] sm:$0xff] }
  0x1d   : > { %639 = vmatpush.bf16.msra.mxu2 %v2417_v25  ;;  %v496_v22 = vrot.slane %v494_v13, 5  ;;  %v2476_v23 = vld [vmem:[%s3003_s1 + $0x1f0] sm:$0xff]  ;;  %v2443_v25 = vld [vmem:[%s3003_s1 + $0x128] sm:$0xff]  ;;  %v2462_v37 = vld [vmem:[%s3003_s1 + $0x1a0] sm:$0xff] }
  0x1e   : > { %774 = vmatpush.bf16.msra.mxu3 %v2429_v30  ;;  %v433_v27 = vld [vmem:[%s2598_s4 + $0x28] sm:$0xf]  ;;  %v2398_v30 = vld [vmem:[%s3003_s1 + $0x20] sm:$0xff]  ;;  %v1841_v39 = vld [vmem:[%s2598_s4 + $0x78] sm:$0xf]  ;;  %v501_v45 = vrot.slane %v499_v28, 4 }
  0x1f   : > { %v513_v33 = vshrl.u32 %v433_v27, 16  ;;  %v516_v34 = vshll.u32 %v433_v27, 16  ;;  %v2475_v35 = vld [vmem:[%s3003_s1 + $0x1e8] sm:$0xff]  ;;  %v2403_v42 = vld [vmem:[%s2598_s4 + $0x5c] sm:$0xf0]  ;;  %v504_v46 = vrot.slane %v502_v29, 5 }
  0x20   : > { %2514 = vmatpush.bf16.msra.mxu1 %v2408_v31  ;;  %298 = vmatpush.bf16.msra.mxu0 %v2408_v31  ;;  %v483_v31 = vsel %vm2635_vm2, %v478_v20, %v482_v19  ;;  %v2397_v47 = vld [vmem:[%s3003_s1 + $0x18] sm:$0xff]  ;;  %v432_v51 = vld [vmem:[%s2598_s4 + $0x24] sm:$0x1]  ;;  %v2001_v56 = vld [vmem:[%s2598_s4 + $0xa0] sm:$0xf] }
  0x21   : > { %640 = vmatpush.bf16.msra.mxu2 %v2416_v32  ;;  %v497_v32 = vsel %vm2635_vm2, %v492_v21, %v496_v22  ;;  %v573_v43 = vunpack.c.l.b16 %v483_v31  ;;  %v515_v48 = vrot.slane %v513_v33, 4  ;;  %v2441_v50 = vld [vmem:[%s3003_s1 + $0x118] sm:$0xff]  ;;  %v2423_v57 = vld [vmem:[%s2598_s4 + $0xa4] sm:$0xf0]  ;;  %v505_v58 = vor.u32 %v504_v46, %v501_v45  ;;  %v2396_v59 = vld [vmem:[%s3003_s1 + $0x10] sm:$0xff] }
  0x22   : > { %775 = vmatpush.bf16.msra.mxu3 %v2428_v40  ;;  %v2405_v40 = vld [vmem:[%s2598_s4 + $0x7c] sm:$0xf0]  ;;  %v508_v60 = vshll.u32 %v432_v51, 16  ;;  %v2440_v63 = vld [vmem:[%s3003_s1 + $0x110] sm:$0xff]  ;;  %v2395_v2 = vld [vmem:[%s3003_s1 + $0x8] sm:$0xff] }
  0x23   : > { %v2474_v7 = vld [vmem:[%s3003_s1 + $0x1e0] sm:$0xff]  ;;  %v435_v8 = vld [vmem:[%s2598_s4 + $0x30] sm:$0xf]  ;;  %v2439_v9 = vld [vmem:[%s3003_s1 + $0x108] sm:$0xff] }
  0x24   : > { %2515 = vmatpush.bf16.msra.mxu1 %v2407_v41  ;;  %299 = vmatpush.bf16.msra.mxu0 %v2407_v41  ;;  %v1833_v41 = vld [vmem:[%s2598_s4 + $0x58] sm:$0xf]  ;;  %v2460_v11 = vld [vmem:[%s3003_s1 + $0x190] sm:$0xff]  ;;  %v527_v12 = vshrl.u32 %v435_v8, 16  ;;  %v530_v13 = vshll.u32 %v435_v8, 16  ;;  %v2438_v21 = vld [vmem:[%s3003_s1 + $0x100] sm:$0xff] }
  0x25   : > { %641 = vmatpush.bf16.msra.mxu2 %v2415_v44  ;;  %v574_v44 = vunpack.c.l.b16 %v497_v32  ;;  %v2453_v20 = vld [vmem:[%s3003_s1 + $0x178] sm:$0xff]  ;;  %v1877_v22 = vld [vmem:[%s2598_s4] sm:$0xf]  ;;  %v2452_v33 = vld [vmem:[%s3003_s1 + $0x170] sm:$0xff] }
  0x26   : > { %776 = vmatpush.bf16.msra.mxu3 %v2427_v53  ;;  %v1842_v53 = vor.u32 %v2405_v40, %v1841_v39  ;;  %v2485_v24 = vld [vmem:[%s3003_s1 + $0x238] sm:$0xff]  ;;  %v529_v29 = vrot.slane %v527_v12, 4  ;;  %v2005_v40 = vld [vmem:[%s2598_s4 + $0xb0] sm:$0xf]  ;;  %v2447_v12 = vld [vmem:[%s3003_s1 + $0x148] sm:$0xff] }
  0x27   : > { %v580_v55 = vpack.c.b16 %v574_v44, %v573_v43  ;;  %v2484_v43 = vld [vmem:[%s3003_s1 + $0x230] sm:$0xff] }
  0x28   : > { %2516 = vmatpush.bf16.msra.mxu1 %v2406_v49  ;;  %300 = vmatpush.bf16.msra.mxu0 %v2406_v49  ;;  %v518_v49 = vrot.slane %v516_v34, 5  ;;  %v436_v34 = vld [vmem:[%s2598_s4 + $0x34] sm:$0x1] }
  0x29   : > { %642 = vmatpush.bf16.msra.mxu2 %v2414_v54  ;;  %v1834_v54 = vor.u32 %v2403_v42, %v1833_v41  ;;  %v2424_v41 = vld [vmem:[%s2598_s4 + $0xb4] sm:$0xf0]  ;;  %v536_v44 = vshll.u32 %v436_v34, 16  ;;  %v2325_v34 = vld [vmem:[%s2598_s4 + $0x10] sm:$0xf] }
  0x2a   : > { %777 = vmatpush.bf16.msra.mxu3 %v2426_v6  ;;  %v519_v61 = vor.u32 %v518_v49, %v515_v48  ;;  %v2459_v48 = vld [vmem:[%s3003_s1 + $0x188] sm:$0xff]  ;;  %v2006_v49 = vor.u32 %v2424_v41, %v2005_v40 }
  0x2b   : > { %311 = vmatmul.bf16.vlgmr.msra.gmra.mxu1 %v1838_v3  ;;  %301 = vmatmul.bf16.vlgmr.msra.gmra.mxu0 %v1830_v4  ;;  %v506_v3 = vrot.slane %v505_v58, 4  ;;  %v510_v4 = vrot.slane %v508_v60, 5  ;;  %v538_v51 = vrot.slane %v536_v44, 5  ;;  %v2471_v58 = vld [vmem:[%s3003_s1 + $0x1c8] sm:$0xff]  ;;  %v1889_v44 = vld [vmem:[%s2598_s4 + $0x30] sm:$0xf] }
  0x2c   : > { %394 = vmatpush.bf16.msrb.mxu1 %v2401_v52  ;;  %905 = vmatpush.bf16.msrb.mxu0 %v2445_v0  ;;  %v434_v52 = vld [vmem:[%s2598_s4 + $0x2c] sm:$0x1]  ;;  %v2002_v0 = vor.u32 %v2423_v57, %v2001_v56  ;;  %v2450_v57 = vld [vmem:[%s3003_s1 + $0x160] sm:$0xff] }
  0x2d   : > { %1286 = vmatpush.bf16.msrb.mxu2 %v2465_v1  ;;  %778 = vmatmul.bf16.vlgmr.msra.gmra.mxu3 %v1998_v17  ;;  %v522_v62 = vshll.u32 %v434_v52, 16  ;;  %v2461_v1 = vld [vmem:[%s3003_s1 + $0x198] sm:$0xff]  ;;  %v2483_v56 = vld [vmem:[%s3003_s1 + $0x228] sm:$0xff] }
  0x2e   : > { %643 = vmatmul.bf16.vlgmr.msra.gmra.mxu2 %v579_v5  ;;  %1421 = vmatpush.bf16.msrb.mxu3 %v2477_v14  ;;  %v520_v5 = vrot.slane %v519_v61, 4  ;;  %v2473_v14 = vld [vmem:[%s3003_s1 + $0x1d8] sm:$0xff] }
  0x2f   : > { %v524_v6 = vrot.slane %v522_v62, 5  ;;  %v2449_v62 = vld [vmem:[%s3003_s1 + $0x158] sm:$0xff] }
  0x30   : > { %395 = vmatpush.bf16.msrb.mxu1 %v2400_v10  ;;  %906 = vmatpush.bf16.msrb.mxu0 %v2444_v15  ;;  %v437_v10 = vld [vmem:[%s2598_s4 + $0x38] sm:$0xf]  ;;  %v2394_v15 = vld [vmem:[%s3003_s1] sm:$0xff] }
  0x31   : > { %1287 = vmatpush.bf16.msrb.mxu2 %v2464_v16  ;;  %v511_v16 = vsel %vm2635_vm2, %v506_v3, %v510_v4  ;;  %v525_v17 = vsel %vm2635_vm2, %v520_v5, %v524_v6  ;;  %v544_v19 = vshll.u32 %v437_v10, 16  ;;  %v2448_v5 = vld [vmem:[%s3003_s1 + $0x150] sm:$0xff] }
  0x32   : > { %1422 = vmatpush.bf16.msrb.mxu3 %v2476_v23  ;;  %v2390_v23 = vld [vmem:[%s2598_s4 + $0x4] sm:$0xf0]  ;;  %v575_v27 = vunpack.c.l.b16 %v511_v16  ;;  %v576_v28 = vunpack.c.l.b16 %v525_v17  ;;  %v2480_v16 = vld [vmem:[%s3003_s1 + $0x210] sm:$0xff]  ;;  %v1885_v17 = vld [vmem:[%s2598_s4 + $0x20] sm:$0xf] }
  0x33   : > { %v546_v32 = vrot.slane %v544_v19, 5  ;;  %v2392_v19 = vld [vmem:[%s2598_s4 + $0x24] sm:$0xf0] }
  0x34   : > { %396 = vmatpush.bf16.msrb.mxu1 %v2399_v18  ;;  %907 = vmatpush.bf16.msrb.mxu0 %v2443_v25  ;;  %v541_v18 = vshrl.u32 %v437_v10, 16  ;;  %v2069_v25 = vld [vmem:[%s2598_s4 + $0xd8] sm:$0xf]  ;;  %v581_v39 = vpack.c.b16 %v576_v28, %v575_v27  ;;  %v2425_v10 = vld [vmem:[%s2598_s4 + $0xc4] sm:$0xf0] }
  0x35   : > { %1288 = vmatpush.bf16.msrb.mxu2 %v2463_v26  ;;  %v2434_v26 = vld [vmem:[%s2598_s4 + $0xdc] sm:$0xf0]  ;;  %v2277_v27 = vld [vmem:[%s2598_s4 + $0x50] sm:$0xf]  ;;  %v2466_v28 = vld [vmem:[%s2598_s4 + $0x54] sm:$0xf0] }
  0x36   : > { %1423 = vmatpush.bf16.msrb.mxu3 %v2475_v35  ;;  %v543_v31 = vrot.slane %v541_v18, 4  ;;  %v438_v35 = vld [vmem:[%s2598_s4 + $0x3c] sm:$0x1]  ;;  %v2479_v18 = vld [vmem:[%s3003_s1 + $0x208] sm:$0xff] }
  0x37   : > { %v550_v46 = vshll.u32 %v438_v35, 16 }
  0x38   : > { %397 = vmatpush.bf16.msrb.mxu1 %v2398_v30  ;;  %908 = vmatpush.bf16.msrb.mxu0 %v2442_v36  ;;  %v532_v30 = vrot.slane %v530_v13, 5  ;;  %v1878_v36 = vor.u32 %v2390_v23, %v1877_v22  ;;  %v547_v45 = vor.u32 %v546_v32, %v543_v31  ;;  %v2470_v13 = vld [vmem:[%s3003_s1 + $0x1c0] sm:$0xff]  ;;  %v2205_v22 = vld [vmem:[%s2598_s4 + $0x8] sm:$0xf]  ;;  %v2454_v23 = vld [vmem:[%s2598_s4 + $0xc] sm:$0xf0] }
  0x39   : > { %1289 = vmatpush.bf16.msrb.mxu2 %v2462_v37  ;;  %v2070_v37 = vor.u32 %v2434_v26, %v2069_v25  ;;  %v2206_v26 = vor.u32 %v2454_v23, %v2205_v22  ;;  %v2115_v31 = vld [vmem:[%s2598_s4 + $0x90] sm:$0xf]  ;;  %v2117_v32 = vld [vmem:[%s2598_s4 + $0x98] sm:$0xf] }
  0x3a   : > { %1424 = vmatpush.bf16.msrb.mxu3 %v2474_v7  ;;  %v533_v42 = vor.u32 %v532_v30, %v529_v29  ;;  %v548_v52 = vrot.slane %v547_v45, 4  ;;  %v2278_v29 = vor.u32 %v2466_v28, %v2277_v27  ;;  %v2478_v30 = vld [vmem:[%s3003_s1 + $0x200] sm:$0xff]  ;;  %v959_v35 = vshrl.u32 %v2115_v31, 16  ;;  %v2393_v45 = vld [vmem:[%s2598_s4 + $0x34] sm:$0xf0] }
  0x3b   : > { %316 = vmatmul.bf16.gmra.mxu1 %v1842_v53  ;;  %306 = vmatmul.bf16.gmra.mxu0 %v1834_v54  ;;  %v552_v53 = vrot.slane %v550_v46, 5  ;;  %v2458_v54 = vld [vmem:[%s3003_s1 + $0x180] sm:$0xff]  ;;  %v2081_v46 = vld [vmem:[%s2598_s4 + $0x108] sm:$0xf] }
  0x3c   : > { %398 = vmatpush.bf16.msrb.mxu1 %v2397_v47  ;;  %909 = vmatpush.bf16.msrb.mxu0 %v2441_v50  ;;  %v2451_v47 = vld [vmem:[%s3003_s1 + $0x168] sm:$0xff]  ;;  %v534_v50 = vrot.slane %v533_v42, 4  ;;  %v1489_v42 = vshrl.u32 %v2325_v34, 16 }
  0x3d   : > { %1290 = vmatpush.bf16.msrb.mxu2 %v2461_v1  ;;  %783 = vmatmul.bf16.gmra.mxu3 %v2002_v0  ;;  %v553_v61 = vsel %vm2635_vm2, %v548_v52, %v552_v53  ;;  %v2391_v0 = vld [vmem:[%s2598_s4 + $0x14] sm:$0xf0]  ;;  %v2073_v1 = vld [vmem:[%s2598_s4 + $0xe8] sm:$0xf] }
  0x3e   : > { %648 = vmatmul.bf16.gmra.mxu2 %v580_v55  ;;  %1425 = vmatpush.bf16.msrb.mxu3 %v2473_v14  ;;  %v2472_v55 = vld [vmem:[%s3003_s1 + $0x1d0] sm:$0xff]  ;;  %v539_v60 = vsel %vm2635_vm2, %v534_v50, %v538_v51  ;;  %v578_v4 = vunpack.c.l.b16 %v553_v61  ;;  %v2481_v14 = vld [vmem:[%s3003_s1 + $0x218] sm:$0xff]  ;;  %v961_v51 = vrot.slane %v959_v35, 4 }
  0x3f   : > { %v577_v3 = vunpack.c.l.b16 %v539_v60  ;;  %v2118_v50 = vld [vmem:[%s2598_s4 + $0x9c] sm:$0x1]  ;;  %v2324_v60 = vld [vmem:[%s2598_s4 + $0xc] sm:$0x1]  ;;  %v2326_v61 = vld [vmem:[%s2598_s4 + $0x14] sm:$0x1] }
  0x40   : > { %399 = vmatpush.bf16.msrb.mxu1 %v2396_v59  ;;  %910 = vmatpush.bf16.msrb.mxu0 %v2440_v63  ;;  %v2482_v59 = vld [vmem:[%s3003_s1 + $0x220] sm:$0xff]  ;;  %v1881_v63 = vld [vmem:[%s2598_s4 + $0x10] sm:$0xf] }
  0x41   : > { %1291 = vmatpush.bf16.msrb.mxu2 %v2460_v11  ;;  %v1882_v6 = vor.u32 %v2391_v0, %v1881_v63  ;;  %v582_v8 = vpack.c.b16 %v578_v4, %v577_v3  ;;  %v982_v0 = vshll.u32 %v2118_v50, 16 }
  0x42   : > { %1426 = vmatpush.bf16.msrb.mxu3 %v2472_v55  ;;  %v2455_v55 = vld [vmem:[%s2598_s4 + $0x1c] sm:$0xf0] }
  0x44   : > { %400 = vmatpush.bf16.msrb.mxu1 %v2395_v2  ;;  %911 = vmatpush.bf16.msrb.mxu0 %v2439_v9  ;;  %v2435_v2 = vld [vmem:[%s2598_s4 + $0xec] sm:$0xf0]  ;;  %v2009_v9 = vld [vmem:[%s2598_s4 + $0xc0] sm:$0xf] }
  0x45   : > { %1292 = vmatpush.bf16.msrb.mxu2 %v2459_v48  ;;  %v2074_v7 = vor.u32 %v2435_v2, %v2073_v1  ;;  %v2010_v11 = vor.u32 %v2425_v10, %v2009_v9  ;;  %v2209_v48 = vld [vmem:[%s2598_s4 + $0x18] sm:$0xf]  ;;  %v1498_v10 = vshll.u32 %v2326_v61, 16 }
  0x46   : > { %1427 = vmatpush.bf16.msrb.mxu3 %v2471_v58  ;;  %v1491_v58 = vrot.slane %v1489_v42, 4  ;;  %v2210_v2 = vor.u32 %v2455_v55, %v2209_v48  ;;  %v2122_v42 = vld [vmem:[%s2598_s4 + $0xac] sm:$0x1] }
  0x47   : > { %v1500_v23 = vrot.slane %v1498_v10, 5 }
  0x48   : > { %401 = vmatpush.bf16.msrb.mxu1 %v2394_v15  ;;  %912 = vmatpush.bf16.msrb.mxu0 %v2438_v21  ;;  %v2446_v15 = vld [vmem:[%s3003_s1 + $0x140] sm:$0xff] }
  0x49   : > { %1293 = vmatpush.bf16.msrb.mxu2 %v2458_v54  ;;  %v2436_v21 = vld [vmem:[%s2598_s4 + $0xfc] sm:$0xf0] }
  0x4a   : > { %1428 = vmatpush.bf16.msrb.mxu3 %v2470_v13  ;;  %v2119_v13 = vld [vmem:[%s2598_s4 + $0xa0] sm:$0xf] }
  0x4b   : > { %402 = vmatmul.bf16.vlgmr.msrb.gmra.mxu1 %v1878_v36  ;;  %913 = vmatmul.bf16.vlgmr.msrb.gmra.mxu0 %v2070_v37  ;;  %v962_v36 = vshll.u32 %v2115_v31, 16  ;;  %v973_v37 = vshrl.u32 %v2117_v32, 16 }
  0x4c   : > { %1151 = vmatpush.bf16.msra.mxu1 %v2453_v20  ;;  %1667 = vmatpush.bf16.msra.mxu0 %v2485_v24  ;;  %v2077_v20 = vld [vmem:[%s2598_s4 + $0xf8] sm:$0xf] }
  0x4d   : > { %788 = vmatmul.bf16.gmra.mxu3 %v2006_v49  ;;  %2517 = vmatpush.bf16.msra.mxu2 %v2485_v24  ;;  %v1886_v24 = vor.u32 %v2392_v19, %v1885_v17  ;;  %v2078_v25 = vor.u32 %v2436_v21, %v2077_v20  ;;  %v2116_v49 = vld [vmem:[%s2598_s4 + $0x94] sm:$0x1]  ;;  %v964_v52 = vrot.slane %v962_v36, 5  ;;  %v975_v53 = vrot.slane %v973_v37, 4  ;;  %v2329_v19 = vld [vmem:[%s2598_s4 + $0x20] sm:$0xf] }
  0x4e   : > { %653 = vmatmul.bf16.gmra.mxu2 %v581_v39  ;;  %v976_v39 = vshll.u32 %v2117_v32, 16  ;;  %v968_v63 = vshll.u32 %v2116_v49, 16  ;;  %v1520_v31 = vshll.u32 %v2329_v19, 16  ;;  %v2120_v36 = vld [vmem:[%s2598_s4 + $0xa4] sm:$0x1] }
  0x4f   : > { %v965_v3 = vor.u32 %v964_v52, %v961_v51  ;;  %v2328_v51 = vld [vmem:[%s2598_s4 + $0x1c] sm:$0x1]  ;;  %v2330_v52 = vld [vmem:[%s2598_s4 + $0x24] sm:$0x1] }
  0x50   : > { %1152 = vmatpush.bf16.msra.mxu1 %v2452_v33  ;;  %1668 = vmatpush.bf16.msra.mxu0 %v2484_v43  ;;  %v2323_v33 = vld [vmem:[%s2598_s4 + $0x8] sm:$0xf]  ;;  %v978_v54 = vrot.slane %v976_v39, 5 }
  0x51   : > { %2518 = vmatpush.bf16.msra.mxu2 %v2484_v43  ;;  %v1475_v40 = vshrl.u32 %v2323_v33, 16  ;;  %v1478_v41 = vshll.u32 %v2323_v33, 16  ;;  %v1492_v43 = vshll.u32 %v2325_v34, 16 }
  0x52   : > { %v979_v4 = vor.u32 %v978_v54, %v975_v53  ;;  %v2213_v53 = vld [vmem:[%s2598_s4 + $0x28] sm:$0xf]  ;;  %v2456_v54 = vld [vmem:[%s2598_s4 + $0x2c] sm:$0xf0] }
  0x54   : > { %1153 = vmatpush.bf16.msra.mxu1 %v2451_v47  ;;  %1669 = vmatpush.bf16.msra.mxu0 %v2483_v56  ;;  %v2437_v47 = vld [vmem:[%s2598_s4 + $0x10c] sm:$0xf0] }
  0x55   : > { %2519 = vmatpush.bf16.msra.mxu2 %v2483_v56  ;;  %v1477_v56 = vrot.slane %v1475_v40, 4  ;;  %v2082_v1 = vor.u32 %v2437_v47, %v2081_v46  ;;  %v1522_v46 = vrot.slane %v1520_v31, 5 }
  0x58   : > { %1154 = vmatpush.bf16.msra.mxu1 %v2450_v57  ;;  %1670 = vmatpush.bf16.msra.mxu0 %v2482_v59  ;;  %v1480_v57 = vrot.slane %v1478_v41, 5 }
  0x59   : > { %2520 = vmatpush.bf16.msra.mxu2 %v2482_v59  ;;  %v1494_v59 = vrot.slane %v1492_v43, 5 }
  0x5b   : > { %407 = vmatmul.bf16.gmra.mxu1 %v1882_v6  ;;  %918 = vmatmul.bf16.gmra.mxu0 %v2074_v7  ;;  %v2467_v6 = vld [vmem:[%s2598_s4 + $0x64] sm:$0xf0]  ;;  %v1481_v7 = vor.u32 %v1480_v57, %v1477_v56  ;;  %v1495_v9 = vor.u32 %v1494_v59, %v1491_v58  ;;  %v996_v56 = vshll.u32 %v2120_v36, 16  ;;  %v1010_v58 = vshll.u32 %v2122_v42, 16  ;;  %v2124_v42 = vld [vmem:[%s2598_s4 + $0xb4] sm:$0x1] }
  0x5c   : > { %1155 = vmatpush.bf16.msra.mxu1 %v2449_v62  ;;  %1671 = vmatpush.bf16.msra.mxu0 %v2481_v14  ;;  %v1890_v62 = vor.u32 %v2393_v45, %v1889_v44 }
  0x5d   : > { %793 = vmatmul.bf16.gmra.mxu3 %v2010_v11  ;;  %2521 = vmatpush.bf16.msra.mxu2 %v2481_v14  ;;  %v970_v11 = vrot.slane %v968_v63, 5  ;;  %v2121_v14 = vld [vmem:[%s2598_s4 + $0xa8] sm:$0xf]  ;;  %v1482_v20 = vrot.slane %v1481_v7, 4  ;;  %v1496_v22 = vrot.slane %v1495_v9, 4  ;;  %v1012_v7 = vrot.slane %v1010_v58, 5 }
  0x5e   : > { %658 = vmatmul.bf16.gmra.mxu2 %v582_v8  ;;  %v1484_v8 = vshll.u32 %v2324_v60, 16  ;;  %v1004_v27 = vshll.u32 %v2121_v14, 16  ;;  %v1512_v60 = vshll.u32 %v2328_v51, 16  ;;  %v2217_v51 = vld [vmem:[%s2598_s4 + $0x38] sm:$0xf] }
  0x5f   : > { %v1501_v35 = vsel %vm2635_vm2, %v1496_v22, %v1500_v23  ;;  %v2336_v58 = vld [vmem:[%s2598_s4 + $0x3c] sm:$0x1] }
  0x60   : > { %1156 = vmatpush.bf16.msra.mxu1 %v2448_v5  ;;  %1672 = vmatpush.bf16.msra.mxu0 %v2480_v16  ;;  %v2281_v5 = vld [vmem:[%s2598_s4 + $0x60] sm:$0xf]  ;;  %v1486_v21 = vrot.slane %v1484_v8, 5  ;;  %v1006_v41 = vrot.slane %v1004_v27, 5  ;;  %v1604_v50 = vunpack.c.l.b16 %v1501_v35  ;;  %v1514_v9 = vrot.slane %v1512_v60, 5 }
  0x61   : > { %2522 = vmatpush.bf16.msra.mxu2 %v2480_v16  ;;  %v980_v16 = vrot.slane %v979_v4, 4  ;;  %v2282_v17 = vor.u32 %v2467_v6, %v2281_v5  ;;  %v998_v5 = vrot.slane %v996_v56, 5  ;;  %v2457_v56 = vld [vmem:[%s2598_s4 + $0x3c] sm:$0xf0] }
  0x62   : > { %v1487_v34 = vsel %vm2635_vm2, %v1482_v20, %v1486_v21  ;;  %v2335_v21 = vld [vmem:[%s2598_s4 + $0x38] sm:$0xf] }
  0x63   : > { %v1603_v49 = vunpack.c.l.b16 %v1487_v34  ;;  %v1562_v34 = vshll.u32 %v2335_v21, 16 }
  0x64   : > { %1157 = vmatpush.bf16.msra.mxu1 %v2447_v12  ;;  %1673 = vmatpush.bf16.msra.mxu0 %v2479_v18  ;;  %v984_v12 = vrot.slane %v982_v0, 5 }
  0x65   : > { %2523 = vmatpush.bf16.msra.mxu2 %v2479_v18  ;;  %v2327_v18 = vld [vmem:[%s2598_s4 + $0x18] sm:$0xf]  ;;  %v1611_v0 = vpack.c.b16 %v1604_v50, %v1603_v49 }
  0x66   : > { %v1503_v28 = vshrl.u32 %v2327_v18, 16  ;;  %v985_v33 = vsel %vm2635_vm2, %v980_v16, %v984_v12  ;;  %v2123_v12 = vld [vmem:[%s2598_s4 + $0xb0] sm:$0xf] }
  0x67   : > { %v1088_v48 = vunpack.c.l.b16 %v985_v33  ;;  %v2333_v16 = vld [vmem:[%s2598_s4 + $0x30] sm:$0xf]  ;;  %v1018_v20 = vshll.u32 %v2123_v12, 16  ;;  %v1559_v33 = vshrl.u32 %v2335_v21, 16 }
  0x68   : > { %1158 = vmatpush.bf16.msra.mxu1 %v2446_v15  ;;  %1674 = vmatpush.bf16.msra.mxu0 %v2478_v30  ;;  %v966_v15 = vrot.slane %v965_v3, 4  ;;  %v1505_v43 = vrot.slane %v1503_v28, 4  ;;  %v2468_v3 = vld [vmem:[%s2598_s4 + $0x74] sm:$0xf0] }
  0x69   : > { %2524 = vmatpush.bf16.msra.mxu2 %v2478_v30  ;;  %v1517_v30 = vshrl.u32 %v2329_v19, 16  ;;  %v1015_v19 = vshrl.u32 %v2123_v12, 16  ;;  %v1020_v36 = vrot.slane %v1018_v20, 5 }
  0x6a   : > { %v971_v32 = vsel %vm2635_vm2, %v966_v15, %v970_v11  ;;  %v2331_v15 = vld [vmem:[%s2598_s4 + $0x28] sm:$0xf] }
  0x6b   : > { %412 = vmatmul.bf16.gmra.mxu1 %v1886_v24  ;;  %923 = vmatmul.bf16.gmra.mxu0 %v2078_v25  ;;  %v987_v24 = vshrl.u32 %v2119_v13, 16  ;;  %v990_v25 = vshll.u32 %v2119_v13, 16  ;;  %v1519_v45 = vrot.slane %v1517_v30, 4  ;;  %v1087_v47 = vunpack.c.l.b16 %v971_v32 }
  0x6c   : > { %v1531_v27 = vshrl.u32 %v2331_v15, 16  ;;  %v1534_v28 = vshll.u32 %v2331_v15, 16  ;;  %v1548_v30 = vshll.u32 %v2333_v16, 16  ;;  %v1017_v35 = vrot.slane %v1015_v19, 4 }
  0x6d   : > { %1429 = vmatmul.bf16.vlgmr.msrb.gmra.mxu3 %v2278_v29  ;;  %v1506_v29 = vshll.u32 %v2327_v18, 16  ;;  %v989_v37 = vrot.slane %v987_v24, 4  ;;  %v992_v39 = vrot.slane %v990_v25, 5  ;;  %v1523_v61 = vor.u32 %v1522_v46, %v1519_v45  ;;  %v2332_v46 = vld [vmem:[%s2598_s4 + $0x2c] sm:$0x1] }
  0x6e   : > { %1294 = vmatmul.bf16.vlgmr.msrb.gmra.mxu2 %v2206_v26  ;;  %v1001_v26 = vshrl.u32 %v2121_v14, 16  ;;  %v1095_v63 = vpack.c.b16 %v1088_v48, %v1087_v47  ;;  %v2125_v14 = vld [vmem:[%s2598_s4 + $0xb8] sm:$0xf]  ;;  %v1533_v47 = vrot.slane %v1531_v27, 4  ;;  %v1536_v48 = vrot.slane %v1534_v28, 5 }
  0x6f   : > { %v1508_v44 = vrot.slane %v1506_v29, 5  ;;  %v993_v55 = vor.u32 %v992_v39, %v989_v37  ;;  %v1524_v10 = vrot.slane %v1523_v61, 4  ;;  %v1029_v24 = vshrl.u32 %v2125_v14, 16  ;;  %v2129_v27 = vld [vmem:[%s2598_s4 + $0xc8] sm:$0xf] }
  0x70   : > { %v1003_v40 = vrot.slane %v1001_v26, 4  ;;  %v1032_v25 = vshll.u32 %v2125_v14, 16  ;;  %v2337_v26 = vld [vmem:[%s2598_s4 + $0x40] sm:$0xf]  ;;  %v1545_v29 = vshrl.u32 %v2333_v16, 16  ;;  %v1550_v50 = vrot.slane %v1548_v30, 5 }
  0x71   : > { %v1509_v59 = vor.u32 %v1508_v44, %v1505_v43  ;;  %v994_v4 = vrot.slane %v993_v55, 4  ;;  %v1573_v37 = vshrl.u32 %v2337_v26, 16  ;;  %v1576_v39 = vshll.u32 %v2337_v26, 16  ;;  %v2126_v43 = vld [vmem:[%s2598_s4 + $0xbc] sm:$0x1] }
  0x72   : > { %v1007_v57 = vor.u32 %v1006_v41, %v1003_v40  ;;  %v1031_v44 = vrot.slane %v1029_v24, 4  ;;  %v1034_v45 = vrot.slane %v1032_v25, 5  ;;  %v1547_v49 = vrot.slane %v1545_v29, 4  ;;  %v2127_v24 = vld [vmem:[%s2598_s4 + $0xc0] sm:$0xf] }
  0x73   : > { %v1510_v8 = vrot.slane %v1509_v59, 4  ;;  %v1575_v59 = vrot.slane %v1573_v37, 4  ;;  %v1578_v60 = vrot.slane %v1576_v39, 5  ;;  %v1024_v61 = vshll.u32 %v2124_v42, 16 }
  0x74   : > { %v1008_v6 = vrot.slane %v1007_v57, 4  ;;  %v1021_v57 = vor.u32 %v1020_v36, %v1017_v35  ;;  %v1057_v35 = vshrl.u32 %v2129_v27, 16  ;;  %v1060_v36 = vshll.u32 %v2129_v27, 16 }
  0x75   : > { %v1515_v22 = vsel %vm2635_vm2, %v1510_v8, %v1514_v9  ;;  %v2469_v8 = vld [vmem:[%s2598_s4 + $0x84] sm:$0xf0]  ;;  %v1579_v12 = vor.u32 %v1578_v60, %v1575_v59  ;;  %v1026_v14 = vrot.slane %v1024_v61, 5 }
  0x76   : > { %v1013_v18 = vsel %vm2635_vm2, %v1008_v6, %v1012_v7  ;;  %v1605_v40 = vunpack.c.l.b16 %v1515_v22  ;;  %v2218_v6 = vor.u32 %v2457_v56, %v2217_v51  ;;  %v2289_v7 = vld [vmem:[%s2598_s4 + $0x80] sm:$0xf] }
  0x77   : > { %v1090_v32 = vunpack.c.l.b16 %v1013_v18  ;;  %v2290_v18 = vor.u32 %v2469_v8, %v2289_v7  ;;  %v1580_v25 = vrot.slane %v1579_v12, 4 }
  0x7b   : > { %417 = vmatmul.bf16.gmra.mxu1 %v1890_v62  ;;  %928 = vmatmul.bf16.gmra.mxu0 %v2082_v1  ;;  %v1526_v62 = vshll.u32 %v2330_v52, 16  ;;  %v2214_v1 = vor.u32 %v2456_v54, %v2213_v53  ;;  %v2334_v52 = vld [vmem:[%s2598_s4 + $0x34] sm:$0x1]  ;;  %v1561_v53 = vrot.slane %v1559_v33, 4  ;;  %v1564_v54 = vrot.slane %v1562_v34, 5 }
  0x7c   : > { %v1046_v34 = vshll.u32 %v2127_v24, 16 }
  0x7d   : > { %1434 = vmatmul.bf16.gmra.mxu3 %v2282_v17  ;;  %v1528_v11 = vrot.slane %v1526_v62, 5  ;;  %v999_v17 = vsel %vm2635_vm2, %v994_v4, %v998_v5  ;;  %v1035_v62 = vor.u32 %v1034_v45, %v1031_v44  ;;  %v1551_v4 = vor.u32 %v1550_v50, %v1547_v49  ;;  %v2130_v50 = vld [vmem:[%s2598_s4 + $0xcc] sm:$0x1] }
  0x7e   : > { %1299 = vmatmul.bf16.gmra.mxu2 %v2210_v2  ;;  %v2285_v2 = vld [vmem:[%s2598_s4 + $0x70] sm:$0xf]  ;;  %v1089_v31 = vunpack.c.l.b16 %v999_v17  ;;  %v1554_v5 = vshll.u32 %v2334_v52, 16  ;;  %v1565_v9 = vor.u32 %v1564_v54, %v1561_v53  ;;  %v1062_v49 = vrot.slane %v1060_v36, 5 }
  0x7f   : > { %v2286_v13 = vor.u32 %v2468_v3, %v2285_v2  ;;  %v1529_v23 = vsel %vm2635_vm2, %v1524_v10, %v1528_v11  ;;  %v1537_v3 = vor.u32 %v1536_v48, %v1533_v47  ;;  %v1568_v10 = vshll.u32 %v2336_v58, 16 }
  0x80   : > { %v1606_v41 = vunpack.c.l.b16 %v1529_v23  ;;  %v1096_v55 = vpack.c.b16 %v1090_v32, %v1089_v31  ;;  %v1022_v11 = vrot.slane %v1021_v57, 4  ;;  %v1036_v15 = vrot.slane %v1035_v62, 4 }
  0x81   : > { %v1538_v19 = vrot.slane %v1537_v3, 4  ;;  %v1552_v20 = vrot.slane %v1551_v4, 4  ;;  %v1556_v21 = vrot.slane %v1554_v5, 5  ;;  %v1566_v22 = vrot.slane %v1565_v9, 4 }
  0x82   : > { %v1612_v2 = vpack.c.b16 %v1606_v41, %v1605_v40  ;;  %v1570_v23 = vrot.slane %v1568_v10, 5  ;;  %v1027_v28 = vsel %vm2635_vm2, %v1022_v11, %v1026_v14  ;;  %v1043_v32 = vshrl.u32 %v2127_v24, 16 }
  0x83   : > { %v1557_v31 = vsel %vm2635_vm2, %v1552_v20, %v1556_v21  ;;  %v1091_v39 = vunpack.c.l.b16 %v1027_v28  ;;  %v1048_v47 = vrot.slane %v1046_v34, 5  ;;  %v1059_v48 = vrot.slane %v1057_v35, 4 }
  0x84   : > { %v1571_v33 = vsel %vm2635_vm2, %v1566_v22, %v1570_v23  ;;  %v1608_v42 = vunpack.c.l.b16 %v1557_v31  ;;  %v1045_v44 = vrot.slane %v1043_v32, 4  ;;  %v1066_v59 = vshll.u32 %v2130_v50, 16 }
  0x85   : > { %v1063_v58 = vor.u32 %v1062_v49, %v1059_v48 }
  0x86   : > { %v1049_v57 = vor.u32 %v1048_v47, %v1045_v44 }
  0x87   : > { %v1064_v62 = vrot.slane %v1063_v58, 4 }
  0x88   : > { %v1050_v60 = vrot.slane %v1049_v57, 4 }
  0x8b   : > { %1159 = vmatmul.bf16.vlgmr.msra.gmra.mxu1 %v1095_v63  ;;  %1675 = vmatmul.bf16.vlgmr.msra.gmra.mxu0 %v1611_v0  ;;  %v1038_v63 = vshll.u32 %v2126_v43, 16  ;;  %v1540_v0 = vshll.u32 %v2332_v46, 16  ;;  %v1609_v43 = vunpack.c.l.b16 %v1571_v33  ;;  %v2128_v46 = vld [vmem:[%s2598_s4 + $0xc4] sm:$0x1] }
  0x8c   : > { %v1052_v53 = vshll.u32 %v2128_v46, 16 }
  0x8d   : > { %1439 = vmatmul.bf16.gmra.mxu3 %v2286_v13  ;;  %v1040_v16 = vrot.slane %v1038_v63, 5  ;;  %v1542_v17 = vrot.slane %v1540_v0, 5  ;;  %v1068_v63 = vrot.slane %v1066_v59, 5 }
  0x8e   : > { %1304 = vmatmul.bf16.gmra.mxu2 %v2214_v1  ;;  %v2338_v1 = vld [vmem:[%s2598_s4 + $0x44] sm:$0x1]  ;;  %v1054_v61 = vrot.slane %v1052_v53, 5 }
  0x8f   : > { %v1582_v13 = vshll.u32 %v2338_v1, 16  ;;  %v1041_v29 = vsel %vm2635_vm2, %v1036_v15, %v1040_v16  ;;  %v1543_v30 = vsel %vm2635_vm2, %v1538_v19, %v1542_v17  ;;  %v1069_v4 = vsel %vm2635_vm2, %v1064_v62, %v1068_v63 }
  0x90   : > { %v1092_v40 = vunpack.c.l.b16 %v1041_v29  ;;  %v1607_v41 = vunpack.c.l.b16 %v1543_v30  ;;  %v1055_v3 = vsel %vm2635_vm2, %v1050_v60, %v1054_v61  ;;  %v1094_v7 = vunpack.c.l.b16 %v1069_v4 }
  0x91   : > { %v1584_v26 = vrot.slane %v1582_v13, 5 }
  0x92   : > { %v1097_v51 = vpack.c.b16 %v1092_v40, %v1091_v39  ;;  %v1613_v52 = vpack.c.b16 %v1608_v42, %v1607_v41 }
  0x93   : > { %v1585_v37 = vsel %vm2635_vm2, %v1580_v25, %v1584_v26 }
  0x94   : > { %v1610_v45 = vunpack.c.l.b16 %v1585_v37 }
  0x96   : > { %v1614_v56 = vpack.c.b16 %v1610_v45, %v1609_v43 }
  0x9b   : > { %1164 = vmatmul.bf16.gmra.mxu1 %v1096_v55  ;;  %1680 = vmatmul.bf16.gmra.mxu0 %v1612_v2 }
  0x9d   : > { %1444 = vmatmul.bf16.gmra.mxu3 %v2290_v18 }
  0x9e   : > { %1309 = vmatmul.bf16.gmra.mxu2 %v2218_v6  ;;  %v1093_v6 = vunpack.c.l.b16 %v1055_v3 }
  0xa0   : > { %v1098_v8 = vpack.c.b16 %v1094_v7, %v1093_v6 }
  0xa8   : > { %v312_v54 = vpop.f32.mrf.mxu1  ;;  %v302_v55 = vpop.f32.mrf.mxu0 }
  0xab   : > { %1169 = vmatmul.bf16.gmra.mxu1 %v1097_v51  ;;  %1685 = vmatmul.bf16.gmra.mxu0 %v1613_v52 }
  0xae   : > { %1690 = vmatmul.bf16.vlgmr.msra.gmra.mxu2 %v1614_v56 }
  0xb0   : > { %v314_v1 = vpop.f32.mrf.mxu1  ;;  %v304_v2 = vpop.f32.mrf.mxu0 }
  0xb1   : > { %v644_v0 = vpop.f32.mrf.mxu2  ;;  %v779_v5 = vpop.f32.mrf.mxu3 }
  0xb8   : > { %v317_v10 = vpop.f32.mrf.mxu1  ;;  %v307_v11 = vpop.f32.mrf.mxu0 }
  0xb9   : > { %v646_v9 = vpop.f32.mrf.mxu2  ;;  %v2943_v12 = vpop.f32.mrf.mxu3 }
  0xbb   : > { %1174 = vmatmul.bf16.gmra.mxu1 %v1098_v8 }
  0xc0   : > { %v319_v14 = vpop.f32.mrf.mxu1  ;;  %v309_v15 = vpop.f32.mrf.mxu0 }
  0xc1   : > { %v649_v13 = vpop.f32.mrf.mxu2  ;;  %v784_v16 = vpop.f32.mrf.mxu3 }
  0xc8   : > { %v403_v18 = vpop.f32.mrf.mxu1  ;;  %v914_v19 = vpop.f32.mrf.mxu0 }
  0xc9   : > { %v651_v17 = vpop.f32.mrf.mxu2  ;;  %v404_v20 = vadd.f32 %v403_v18, %v302_v55  ;;  %v2945_v21 = vpop.f32.mrf.mxu3 }
  0xcb   : > { %v664_v38 = vadd.f32 %v644_v0, %v404_v20 }
  0xcd   : > { %v799_v22 = vadd.f32 %v779_v5, %v664_v38 }
  0xcf   : > { %v934_v23 = vadd.f32 %v914_v19, %v799_v22 }
  0xd0   : > { %v405_v25 = vpop.f32.mrf.mxu1  ;;  %v916_v26 = vpop.f32.mrf.mxu0 }
  0xd1   : > { %v654_v24 = vpop.f32.mrf.mxu2  ;;  %v406_v27 = vadd.f32 %v405_v25, %v304_v2  ;;  %v789_v29 = vpop.f32.mrf.mxu3 }
  0xd3   : > { %v665_v28 = vadd.f32 %v646_v9, %v406_v27 }
  0xd8   : > { %v408_v31 = vpop.f32.mrf.mxu1  ;;  %v919_v32 = vpop.f32.mrf.mxu0 }
  0xd9   : > { %v656_v30 = vpop.f32.mrf.mxu2  ;;  %v409_v33 = vadd.f32 %v408_v31, %v307_v11  ;;  %v2947_v39 = vpop.f32.mrf.mxu3 }
  0xdb   : > { %v666_v34 = vadd.f32 %v649_v13, %v409_v33 }
  0xdd   : > { %v801_v35 = vadd.f32 %v784_v16, %v666_v34 }
  0xdf   : > { %v936_v36 = vadd.f32 %v919_v32, %v801_v35 }
  0xe0   : > { %v410_v40 = vpop.f32.mrf.mxu1  ;;  %v2949_v41 = vpop.f32.mrf.mxu0 }
  0xe1   : > { %v659_v37 = vpop.f32.mrf.mxu2  ;;  %v411_v42 = vadd.f32 %v410_v40, %v309_v15  ;;  %v794_v48 = vpop.f32.mrf.mxu3  ;;  %v800_v15 = vadd.f32 %v2943_v12, %v665_v28 }
  0xe3   : > { %v667_v43 = vadd.f32 %v651_v17, %v411_v42  ;;  %v935_v16 = vadd.f32 %v916_v26, %v800_v15 }
  0xe5   : > { %v802_v31 = vadd.f32 %v2945_v21, %v667_v43 }
  0xe7   : > { %v937_v42 = vadd.f32 %v2949_v41, %v802_v31 }
  0xe8   : > { %v413_v45 = vpop.f32.mrf.mxu1  ;;  %v924_v46 = vpop.f32.mrf.mxu0 }
  0xe9   : > { %v661_v44 = vpop.f32.mrf.mxu2  ;;  %v414_v47 = vadd.f32 %v413_v45, %v312_v54  ;;  %v2957_v58 = vpop.f32.mrf.mxu3 }
  0xeb   : > { %v668_v49 = vadd.f32 %v654_v24, %v414_v47 }
  0xed   : > { %v803_v50 = vadd.f32 %v789_v29, %v668_v49 }
  0xef   : > { %v2951_v51 = vadd.f32 %v924_v46, %v803_v50 }
  0xf0   : > { %v415_v53 = vpop.f32.mrf.mxu1  ;;  %v2953_v55 = vpop.f32.mrf.mxu0 }
  0xf1   : > { %v1295_v52 = vpop.f32.mrf.mxu2  ;;  %v416_v56 = vadd.f32 %v415_v53, %v314_v1  ;;  %v1430_v0 = vpop.f32.mrf.mxu3 }
  0xf3   : > { %v2955_v57 = vadd.f32 %v656_v30, %v416_v56 }
  0xf8   : > { %v418_v60 = vpop.f32.mrf.mxu1  ;;  %v929_v61 = vpop.f32.mrf.mxu0 }
  0xf9   : > { %v1297_v59 = vpop.f32.mrf.mxu2  ;;  %v419_v62 = vadd.f32 %v418_v60, %v317_v10  ;;  %v1432_v1 = vpop.f32.mrf.mxu3  ;;  %v804_v60 = vadd.f32 %v2947_v39, %v2955_v57 }
  0xfb   : > { %v670_v63 = vadd.f32 %v659_v37, %v419_v62 }
  0xfd   : > { %v805_v54 = vadd.f32 %v794_v48, %v670_v63 }
  0xff   : > { %v2959_v2 = vadd.f32 %v929_v61, %v805_v54 }
 0x100   : > { %v420_v4 = vpop.f32.mrf.mxu1  ;;  %v2961_v5 = vpop.f32.mrf.mxu0 }
 0x101   : > { %v1300_v3 = vpop.f32.mrf.mxu2  ;;  %v421_v6 = vadd.f32 %v420_v4, %v319_v14  ;;  %v1435_v38 = vpop.f32.mrf.mxu3  ;;  %v2969_v14 = vld [vmem:[%s3004_s2] ss:$0 sm:$0xff] }
 0x103   : > { %v2963_v7 = vadd.f32 %v661_v44, %v421_v6 }
 0x108   : > { %v1160_v8 = vpop.f32.mrf.mxu1  ;;  %v1676_v9 = vpop.f32.mrf.mxu0 }
 0x109   : > { %v1180_v11 = vadd.f32 %v1160_v8, %v934_v23  ;;  %v1302_v13 = vpop.f32.mrf.mxu2  ;;  %v1437_v35 = vpop.f32.mrf.mxu3 }
 0x10b   : > { %v1315_v10 = vadd.f32 %v1295_v52, %v1180_v11 }
 0x10d   : > { %v1450_v17 = vadd.f32 %v1430_v0, %v1315_v10  ;;  %v939_v0 = vadd.f32 %v2953_v55, %v804_v60 }
 0x10f   : > { %v1696_v22 = vadd.f32 %v1676_v9, %v1450_v17  ;;  %v806_v17 = vadd.f32 %v2957_v58, %v2963_v7 }
 0x110   : > { %v1162_v18 = vpop.f32.mrf.mxu1  ;;  %v1678_v19 = vpop.f32.mrf.mxu0 }
 0x111   : > { %v1181_v20 = vadd.f32 %v1162_v18, %v935_v16  ;;  %v1305_v25 = vpop.f32.mrf.mxu2  ;;  %v1708_v27 = vadd.f32 %v2969_v14, %v1696_v22  ;;  %v1440_v48 = vpop.f32.mrf.mxu3 }
 0x113   : > { %v1316_v24 = vadd.f32 %v1297_v59, %v1181_v20  ;;  %v1716_v32 = vmax.f32 %v1708_v27, 0.0 }
 0x115   : > { %v1451_v23 = vadd.f32 %v1432_v1, %v1316_v24  ;;  %v941_v24 = vadd.f32 %v2961_v5, %v806_v17 }
 0x117   : > { %v1697_v12 = vadd.f32 %v1678_v19, %v1451_v23 }
 0x118   : > { %v1165_v28 = vpop.f32.mrf.mxu1  ;;  %v1681_v29 = vpop.f32.mrf.mxu0 }
 0x119   : > { %v1709_v26 = vadd.f32 %v2969_v14, %v1697_v12  ;;  %v1182_v30 = vadd.f32 %v1165_v28, %v936_v36  ;;  %v1307_v40 = vpop.f32.mrf.mxu2  ;;  %v1442_v4 = vpop.f32.mrf.mxu3 }
 0x11b   : > { %v1717_v33 = vmax.f32 %v1709_v26, 0.0  ;;  %v1317_v34 = vadd.f32 %v1300_v3, %v1182_v30 }
 0x11d   : > { %v2489_v37 = vpack.c.bf16 %v1717_v33, %v1716_v32  ;;  %v1452_v44 = vadd.f32 %v1435_v38, %v1317_v34 }
 0x11f   : > { %2490 = vst [vmem:[%s2978_s21] sm:$0xff] %v2489_v37   ;;  %v1698_v21 = vadd.f32 %v1681_v29, %v1452_v44 }
 0x120   : > { %v1167_v45 = vpop.f32.mrf.mxu1  ;;  %v1683_v36 = vpop.f32.mrf.mxu0 }
 0x121   : > { %v1183_v46 = vadd.f32 %v1167_v45, %v937_v42  ;;  %v1710_v49 = vadd.f32 %v2969_v14, %v1698_v21  ;;  %v1310_v52 = vpop.f32.mrf.mxu2  ;;  %v1445_v55 = vpop.f32.mrf.mxu3 }
 0x123   : > { %v1318_v43 = vadd.f32 %v1302_v13, %v1183_v46  ;;  %v1718_v61 = vmax.f32 %v1710_v49, 0.0 }
 0x125   : > { %v1453_v47 = vadd.f32 %v1437_v35, %v1318_v43 }
 0x127   : > { %v1699_v50 = vadd.f32 %v1683_v36, %v1453_v47 }
 0x128   : > { %v1170_v53 = vpop.f32.mrf.mxu1  ;;  %v1686_v41 = vpop.f32.mrf.mxu0 }
 0x129   : > { %v1711_v56 = vadd.f32 %v2969_v14, %v1699_v50  ;;  %v1184_v59 = vadd.f32 %v1170_v53, %v2951_v51  ;;  %v1312_v8 = vpop.f32.mrf.mxu2  ;;  %v1447_v29 = vpop.f32.mrf.mxu3 }
 0x12b   : > { %v1719_v62 = vmax.f32 %v1711_v56, 0.0  ;;  %v1319_v63 = vadd.f32 %v1305_v25, %v1184_v59 }
 0x12d   : > { %v2494_v54 = vpack.c.bf16 %v1719_v62, %v1718_v61  ;;  %v1454_v3 = vadd.f32 %v1440_v48, %v1319_v63 }
 0x12f   : > { %2506 = vst [vmem:[%s2978_s21 + $0x8] sm:$0xff] %v2494_v54   ;;  %v1700_v9 = vadd.f32 %v1686_v41, %v1454_v3 }
 0x130   : > { %v1172_v6 = vpop.f32.mrf.mxu1  ;;  %v1688_v51 = vpop.f32.mrf.mxu0 }
 0x131   : > { %v1185_v1 = vadd.f32 %v1172_v6, %v939_v0  ;;  %v1712_v15 = vadd.f32 %v2969_v14, %v1700_v9  ;;  %v1691_v38 = vpop.f32.mrf.mxu2 }
 0x133   : > { %v1320_v11 = vadd.f32 %v1307_v40, %v1185_v1  ;;  %v1720_v18 = vmax.f32 %v1712_v15, 0.0 }
 0x135   : > { %v1455_v13 = vadd.f32 %v1442_v4, %v1320_v11 }
 0x137   : > { %v1701_v39 = vadd.f32 %v1688_v51, %v1455_v13 }
 0x138   : > { %v1175_v57 = vpop.f32.mrf.mxu1 }
 0x139   : > { %v1713_v10 = vadd.f32 %v2969_v14, %v1701_v39  ;;  %v1186_v16 = vadd.f32 %v1175_v57, %v2959_v2  ;;  %v1693_v26 = vpop.f32.mrf.mxu2 }
 0x13b   : > { %v1721_v19 = vmax.f32 %v1713_v10, 0.0  ;;  %v1321_v20 = vadd.f32 %v1310_v52, %v1186_v16 }
 0x13d   : > { %v2499_v22 = vpack.c.bf16 %v1721_v19, %v1720_v18  ;;  %v1456_v25 = vadd.f32 %v1445_v55, %v1321_v20 }
 0x13f   : > { %2507 = vst [vmem:[%s2978_s21 + $0x10] sm:$0xff] %v2499_v22   ;;  %v1702_v12 = vadd.f32 %v1691_v38, %v1456_v25 }
 0x140   : > { %v1177_v23 = vpop.f32.mrf.mxu1 }
 0x141   : > { %v1187_v27 = vadd.f32 %v1177_v23, %v941_v24  ;;  %v1714_v30 = vadd.f32 %v2969_v14, %v1702_v12 }
 0x143   : > { %v1322_v28 = vadd.f32 %v1312_v8, %v1187_v27  ;;  %v1722_v31 = vmax.f32 %v1714_v30, 0.0 }
 0x145   : > { %v1457_v2 = vadd.f32 %v1447_v29, %v1322_v28 }
 0x147   : > { %v1703_v58 = vadd.f32 %v1693_v26, %v1457_v2 }
 0x149   : > { %v1715_v7 = vadd.f32 %v2969_v14, %v1703_v58 }
 0x14b   : > { %v1723_v32 = vmax.f32 %v1715_v7, 0.0 }
 0x14d   : > { %v2504_v33 = vpack.c.bf16 %v1723_v32, %v1722_v31 }
 0x14f   : > { %2508 = vst [vmem:[%s2978_s21 + $0x18] sm:$0xff] %v2504_v33  }
 0x150 PF: > { %s13_s12 = sadd.s32 1, %s2541_s12  }
 0x151   : > { %p10_p4 = scmp.ge.s32.totalorder %s13_s12, 4  }
 0x153   :  { %12 = sbr.rel (!%p10_p4) target bundleno = 1 (0x1), region = 75 }

</bundles_post_ra>
